<compile_context>
chip_gen: v7x
topology: tpu7x:2x2x1
jax: 0.10.0
libtpu: 0.0.40
codegen_flags: <defaults>
</compile_context>

<pallas_src>
import functools

import jax
import jax.numpy as jnp
import numpy as np
from jax.experimental import pallas as pl
from jax.experimental.pallas import tpu as pltpu

HIDDEN = 64    # LSTM hidden_size
FC_HID = 32    # first FC layer width
OUT_PAD = 128  # lane-dense padding for the FC head / output


def _lstm_kernel(x_ref,               # (S*B, I)   time-major, flattened
                 wih0_ref,            # (I, 4H)    fused layer-0 input weights  [f,i,o,g]
                 whh0_ref,            # (H, 4H)    fused layer-0 recurrent weights
                 b0_ref,              # (1, 4H)    b_ih + b_hh, layer 0
                 wih1_ref,            # (H, 4H)    layer-1 input weights
                 whh1_ref,            # (H, 4H)    layer-1 recurrent weights
                 b1_ref,              # (1, 4H)    b_ih + b_hh, layer 1
                 fw1_ref, fb1_ref,    # (H, 128), (1, 128)   FC1 zero-padded to 128 lanes
                 fw2_ref, fb2_ref,    # (128, 128), (1, 128) FC2 zero-padded to 128 lanes
                 out_ref,             # (B, 128)   sigmoid output (col 0 is the real value)
                 xproj_ref,           # (S*B, 4H)  VMEM scratch for the hoisted projection
                 *, seq_len, batch):
    H = HIDDEN

    # Hoisted, time-independent layer-0 input projection: one big matmul, parked in
    # VMEM scratch instead of being held live in vregs across the whole recurrence.
    xproj_ref[...] = (jnp.dot(x_ref[...], wih0_ref[...],
                              preferred_element_type=jnp.float32) + b0_ref[...])

    def sigmoid(x):
        # Single-EUP sigmoid: 0.5 * (tanh(x/2) + 1)  (one tanh push per gate).
        return 0.5 * jnp.tanh(0.5 * x) + 0.5

    def gates(pre):
        # Kernel gate lane order is [f, i, o, g] (reordered from PyTorch's [i, f, g, o]
        # in pack_params): f at lane 0, o at the 128-lane vreg boundary.
        f_g = sigmoid(pre[:, 0 * H:1 * H])
        i_g = sigmoid(pre[:, 1 * H:2 * H])
        o_g = sigmoid(pre[:, 2 * H:3 * H])
        g_g = jnp.tanh(pre[:, 3 * H:4 * H])
        return i_g, f_g, g_g, o_g

    zeros = jnp.zeros((batch, H), jnp.float32)
    h0, c0, h1, c1 = zeros, zeros, zeros, zeros

    # Statically unrolled recurrence over the small fixed S.  Weight refs are indexed
    # at the dot call sites; per-step xproj slice is a cheap VMEM reload.
    # (If the bundle dump still shows spills, switch to lax.fori_loop(unroll=True)
    # over a pl.ds slice of xproj_ref.)
    for t in range(seq_len):
        # ----- layer 0: only h0 @ W_hh0 remains on the sequential chain -----
        pre0 = xproj_ref[t * batch:(t + 1) * batch, :] + jnp.dot(
            h0, whh0_ref[...], preferred_element_type=jnp.float32)      # (B, 4H)
        i0, f0, g0, o0 = gates(pre0)
        c0 = f0 * c0 + i0 * g0
        h0 = o0 * jnp.tanh(c0)

        # ----- layer 1: two independent dots (no concat on the critical path) -----
        # h1 @ W_hh_l1 depends only on h1_{t-1} and can overlap with layer-0 above.
        # (inter-layer dropout = identity at inference)
        pre1 = (jnp.dot(h0, wih1_ref[...], preferred_element_type=jnp.float32)
                + jnp.dot(h1, whh1_ref[...], preferred_element_type=jnp.float32)
                + b1_ref[...])                                           # (B, 4H)
        i1, f1, g1, o1 = gates(pre1)
        c1 = f1 * c1 + i1 * g1
        h1 = o1 * jnp.tanh(c1)

    # FC head on the last timestep's top-layer hidden state (lane-dense, 128 wide).
    z1 = jnp.dot(h1, fw1_ref[...], preferred_element_type=jnp.float32) + fb1_ref[...]
    z1 = jnp.maximum(z1, 0.0)                       # ReLU (FC Dropout = identity)
    z2 = jnp.dot(z1, fw2_ref[...], preferred_element_type=jnp.float32) + fb2_ref[...]
    out_ref[...] = sigmoid(z2)


def sentiment_lstm_forward(x, packed_params):
    """x: (B, S, I) float32, batch_first like PyTorch.  Returns (B, 1)."""
    B, S, I = x.shape
    B_pad = ((B + 7) // 8) * 8                 # pad batch to f32 sublane multiple
    if B_pad != B:
        x = jnp.pad(x, ((0, B_pad - B), (0, 0), (0, 0)))
    # time-major, flattened: row t*B_pad + b  ==  (timestep t, batch b)
    x_tm = jnp.transpose(x, (1, 0, 2)).reshape(S * B_pad, I)

    out_pad = pl.pallas_call(
        functools.partial(_lstm_kernel, seq_len=S, batch=B_pad),
        out_shape=jax.ShapeDtypeStruct((B_pad, OUT_PAD), jnp.float32),
        # single invocation, no grid: whole x + weights + xproj scratch resident in
        # VMEM (<< 1 MiB, non-binding on v5e/v6e/v7x)
        scratch_shapes=[pltpu.VMEM((S * B_pad, 4 * HIDDEN), jnp.float32)],
    )(x_tm, *packed_params)
    return out_pad[:B, :1]


def init_params(key, input_size, hidden_size=HIDDEN, fc_hidden=FC_HID):
    """Deterministic synthetic parameters in native PyTorch shapes."""
    ks = jax.random.split(key, 12)
    s = 0.1
    rnd = lambda k, shp: (s * jax.random.normal(k, shp)).astype(jnp.float32)
    return (
        rnd(ks[0], (4 * hidden_size, input_size)),    # w_ih_l0
        rnd(ks[1], (4 * hidden_size, hidden_size)),   # w_hh_l0
        rnd(ks[2], (4 * hidden_size,)),               # b_ih_l0
        rnd(ks[3], (4 * hidden_size,)),               # b_hh_l0
        rnd(ks[4], (4 * hidden_size, hidden_size)),   # w_ih_l1
        rnd(ks[5], (4 * hidden_size, hidden_size)),   # w_hh_l1
        rnd(ks[6], (4 * hidden_size,)),               # b_ih_l1
        rnd(ks[7], (4 * hidden_size,)),               # b_hh_l1
        rnd(ks[8], (fc_hidden, hidden_size)),         # fc1_w
        rnd(ks[9], (fc_hidden,)),                     # fc1_b
        rnd(ks[10], (1, fc_hidden)),                  # fc2_w
        rnd(ks[11], (1,)),                            # fc2_b
    )


def pack_params(raw):
    """Rearrange PyTorch-shaped weights into the fused, lane-dense kernel layout."""
    (w_ih_l0, w_hh_l0, b_ih_l0, b_hh_l0,
     w_ih_l1, w_hh_l1, b_ih_l1, b_hh_l1,
     fc1_w, fc1_b, fc2_w, fc2_b) = raw
    H = HIDDEN

    def reorder(w):
        # last-axis gate columns: PyTorch [i, f, g, o] -> kernel [f, i, o, g]
        return jnp.concatenate([w[..., 1 * H:2 * H], w[..., 0 * H:1 * H],
                                w[..., 3 * H:4 * H], w[..., 2 * H:3 * H]], axis=-1)

    wih0 = reorder(w_ih_l0.T)                                   # (I, 4H)
    whh0 = reorder(w_hh_l0.T)                                   # (H, 4H)
    b0 = reorder((b_ih_l0 + b_hh_l0).reshape(1, 4 * H))         # (1, 4H)
    wih1 = reorder(w_ih_l1.T)                                   # (H, 4H)
    whh1 = reorder(w_hh_l1.T)                                   # (H, 4H)
    b1 = reorder((b_ih_l1 + b_hh_l1).reshape(1, 4 * H))         # (1, 4H)

    # FC head zero-padded to 128 lanes so the kernel's final store is unmasked.
    fw1 = jnp.zeros((H, OUT_PAD), jnp.float32).at[:, :FC_HID].set(fc1_w.T)
    fb1 = jnp.zeros((1, OUT_PAD), jnp.float32).at[:, :FC_HID].set(fc1_b)
    fw2 = jnp.zeros((OUT_PAD, OUT_PAD), jnp.float32).at[:FC_HID, :1].set(fc2_w.T)
    fb2 = jnp.zeros((1, OUT_PAD), jnp.float32).at[:, :1].set(fc2_b.reshape(1, 1))
    return (wih0, whh0, b0, wih1, whh1, b1, fw1, fb1, fw2, fb2)


def reference_forward(x, raw):
    """Pure-JAX reference matching PyTorch LSTM + FC semantics (eval mode)."""
    (w_ih_l0, w_hh_l0, b_ih_l0, b_hh_l0,
     w_ih_l1, w_hh_l1, b_ih_l1, b_hh_l1,
     fc1_w, fc1_b, fc2_w, fc2_b) = raw
    B, S, I = x.shape
    H = HIDDEN

    def cell(inp, h, c, w_ih, w_hh, b_ih, b_hh):
        z = inp @ w_ih.T + h @ w_hh.T + b_ih + b_hh           # (B, 4H), gates i,f,g,o
        i_g = jax.nn.sigmoid(z[:, 0 * H:1 * H])
        f_g = jax.nn.sigmoid(z[:, 1 * H:2 * H])
        g_g = jnp.tanh(z[:, 2 * H:3 * H])
        o_g = jax.nn.sigmoid(z[:, 3 * H:4 * H])
        c_new = f_g * c + i_g * g_g
        return o_g * jnp.tanh(c_new), c_new

    h0 = jnp.zeros((B, H)); c0 = jnp.zeros((B, H))
    h1 = jnp.zeros((B, H)); c1 = jnp.zeros((B, H))
    for t in range(S):
        x_t = x[:, t, :]
        h0, c0 = cell(x_t, h0, c0, w_ih_l0, w_hh_l0, b_ih_l0, b_hh_l0)
        h1, c1 = cell(h0, h1, c1, w_ih_l1, w_hh_l1, b_ih_l1, b_hh_l1)
    z1 = jnp.maximum(h1 @ fc1_w.T + fc1_b, 0.0)
    return jax.nn.sigmoid(z1 @ fc2_w.T + fc2_b)


if __name__ == "__main__":
    key = jax.random.PRNGKey(0)
    k_x, k_p = jax.random.split(key)

    B, S, I = 2, 8, 4  # batch, seq_len, input_size
    x = jax.random.normal(k_x, (B, S, I), dtype=jnp.float32)
    raw = init_params(k_p, input_size=I)
    packed = pack_params(raw)

    out = jax.block_until_ready(sentiment_lstm_forward(x, packed))
    ref = jax.block_until_ready(reference_forward(x, raw))

    assert out.shape == (B, 1), out.shape
    # Slightly looser than 1e-5: kernel uses MXU default precision and the
    # tanh-form sigmoid (mathematically identical, numerically a few ULPs off).
    np.testing.assert_allclose(np.asarray(out), np.asarray(ref), atol=1e-4, rtol=1e-4)
    print("KERNEL_OK")
</pallas_src>

<mosaic_0001>
module attributes {stable_mosaic.version = 11 : i64} {
  func.func @_lstm_kernel(%arg0: memref<64x4xf32, #tpu.memory_space<vmem>>, %arg1: memref<4x256xf32, #tpu.memory_space<vmem>>, %arg2: memref<64x256xf32, #tpu.memory_space<vmem>>, %arg3: memref<1x256xf32, #tpu.memory_space<vmem>>, %arg4: memref<64x256xf32, #tpu.memory_space<vmem>>, %arg5: memref<64x256xf32, #tpu.memory_space<vmem>>, %arg6: memref<1x256xf32, #tpu.memory_space<vmem>>, %arg7: memref<64x128xf32, #tpu.memory_space<vmem>>, %arg8: memref<1x128xf32, #tpu.memory_space<vmem>>, %arg9: memref<128x128xf32, #tpu.memory_space<vmem>>, %arg10: memref<1x128xf32, #tpu.memory_space<vmem>>, %arg11: memref<8x128xf32, #tpu.memory_space<vmem>>, %arg12: memref<64x256xf32, #tpu.memory_space<vmem>>) attributes {dimension_semantics = [], scalar_prefetch = 0 : i64, scratch_operands = 1 : i64, tpu.core_type = #tpu.core_type<tc>} {
    %c0 = arith.constant 0 : index
    %c0_0 = arith.constant 0 : index
    %0 = vector.load %arg0[%c0, %c0_0] : memref<64x4xf32, #tpu.memory_space<vmem>>, vector<64x4xf32>
    %c0_1 = arith.constant 0 : index
    %c0_2 = arith.constant 0 : index
    %1 = vector.load %arg1[%c0_1, %c0_2] : memref<4x256xf32, #tpu.memory_space<vmem>>, vector<4x256xf32>
    %cst = arith.constant dense<0.000000e+00> : vector<64x256xf32>
    %2 = tpu.matmul %0, %1, %cst {dimension_numbers = #tpu.dot_dimension_numbers<[1], [0], [0], [1], [0, 0, 1, 1], [], []>} : vector<64x4xf32>, vector<4x256xf32>, vector<64x256xf32> -> vector<64x256xf32>
    %c0_3 = arith.constant 0 : index
    %c0_4 = arith.constant 0 : index
    %3 = vector.load %arg3[%c0_3, %c0_4] : memref<1x256xf32, #tpu.memory_space<vmem>>, vector<1x256xf32>
    %4 = vector.broadcast %3 : vector<1x256xf32> to vector<64x256xf32>
    %5 = arith.addf %2, %4 : vector<64x256xf32>
    %c0_5 = arith.constant 0 : index
    %c0_6 = arith.constant 0 : index
    %6 = vector.load %arg12[%c0_5, %c0_6] : memref<64x256xf32, #tpu.memory_space<vmem>>, vector<64x256xf32>
    tpu.vector_store %arg12[%c0_5, %c0_6], %5 {strides = array<i32>} : memref<64x256xf32, #tpu.memory_space<vmem>>, vector<64x256xf32>,
    %cst_7 = arith.constant 0.000000e+00 : f32
    %7 = vector.broadcast %cst_7 : f32 to vector<8x64xf32>
    %c0_8 = arith.constant 0 : index
    %c0_9 = arith.constant 0 : index
    %8 = vector.load %arg12[%c0_8, %c0_9] : memref<64x256xf32, #tpu.memory_space<vmem>>, vector<8x256xf32>
    %c0_10 = arith.constant 0 : index
    %c0_11 = arith.constant 0 : index
    %9 = vector.load %arg2[%c0_10, %c0_11] : memref<64x256xf32, #tpu.memory_space<vmem>>, vector<64x256xf32>
    %cst_12 = arith.constant dense<0.000000e+00> : vector<8x256xf32>
    %10 = tpu.matmul %7, %9, %cst_12 {dimension_numbers = #tpu.dot_dimension_numbers<[1], [0], [0], [1], [0, 0, 1, 1], [], []>} : vector<8x64xf32>, vector<64x256xf32>, vector<8x256xf32> -> vector<8x256xf32>
    %11 = arith.addf %8, %10 : vector<8x256xf32>
    %12 = vector.extract_strided_slice %11 {offsets = [0, 0], sizes = [8, 64], strides = [1, 1]} : vector<8x256xf32> to vector<8x64xf32>
    %cst_13 = arith.constant 5.000000e-01 : f32
    %13 = vector.broadcast %cst_13 : f32 to vector<8x64xf32>
    %14 = arith.mulf %13, %12 : vector<8x64xf32>
    %15 = math.tanh %14 : vector<8x64xf32>
    %cst_14 = arith.constant 5.000000e-01 : f32
    %16 = vector.broadcast %cst_14 : f32 to vector<8x64xf32>
    %17 = arith.mulf %16, %15 : vector<8x64xf32>
    %cst_15 = arith.constant 5.000000e-01 : f32
    %18 = vector.broadcast %cst_15 : f32 to vector<8x64xf32>
    %19 = arith.addf %17, %18 : vector<8x64xf32>
    %20 = vector.extract_strided_slice %11 {offsets = [0, 64], sizes = [8, 64], strides = [1, 1]} : vector<8x256xf32> to vector<8x64xf32>
    %cst_16 = arith.constant 5.000000e-01 : f32
    %21 = vector.broadcast %cst_16 : f32 to vector<8x64xf32>
    %22 = arith.mulf %21, %20 : vector<8x64xf32>
    %23 = math.tanh %22 : vector<8x64xf32>
    %cst_17 = arith.constant 5.000000e-01 : f32
    %24 = vector.broadcast %cst_17 : f32 to vector<8x64xf32>
    %25 = arith.mulf %24, %23 : vector<8x64xf32>
    %cst_18 = arith.constant 5.000000e-01 : f32
    %26 = vector.broadcast %cst_18 : f32 to vector<8x64xf32>
    %27 = arith.addf %25, %26 : vector<8x64xf32>
    %28 = vector.extract_strided_slice %11 {offsets = [0, 128], sizes = [8, 64], strides = [1, 1]} : vector<8x256xf32> to vector<8x64xf32>
    %cst_19 = arith.constant 5.000000e-01 : f32
    %29 = vector.broadcast %cst_19 : f32 to vector<8x64xf32>
    %30 = arith.mulf %29, %28 : vector<8x64xf32>
    %31 = math.tanh %30 : vector<8x64xf32>
    %cst_20 = arith.constant 5.000000e-01 : f32
    %32 = vector.broadcast %cst_20 : f32 to vector<8x64xf32>
    %33 = arith.mulf %32, %31 : vector<8x64xf32>
    %cst_21 = arith.constant 5.000000e-01 : f32
    %34 = vector.broadcast %cst_21 : f32 to vector<8x64xf32>
    %35 = arith.addf %33, %34 : vector<8x64xf32>
    %36 = vector.extract_strided_slice %11 {offsets = [0, 192], sizes = [8, 64], strides = [1, 1]} : vector<8x256xf32> to vector<8x64xf32>
    %37 = math.tanh %36 : vector<8x64xf32>
    %38 = arith.mulf %19, %7 : vector<8x64xf32>
    %39 = arith.mulf %27, %37 : vector<8x64xf32>
    %40 = arith.addf %38, %39 : vector<8x64xf32>
    %41 = math.tanh %40 : vector<8x64xf32>
    %42 = arith.mulf %35, %41 : vector<8x64xf32>
    %c0_22 = arith.constant 0 : index
    %c0_23 = arith.constant 0 : index
    %43 = vector.load %arg4[%c0_22, %c0_23] : memref<64x256xf32, #tpu.memory_space<vmem>>, vector<64x256xf32>
    %cst_24 = arith.constant dense<0.000000e+00> : vector<8x256xf32>
    %44 = tpu.matmul %42, %43, %cst_24 {dimension_numbers = #tpu.dot_dimension_numbers<[1], [0], [0], [1], [0, 0, 1, 1], [], []>} : vector<8x64xf32>, vector<64x256xf32>, vector<8x256xf32> -> vector<8x256xf32>
    %c0_25 = arith.constant 0 : index
    %c0_26 = arith.constant 0 : index
    %45 = vector.load %arg5[%c0_25, %c0_26] : memref<64x256xf32, #tpu.memory_space<vmem>>, vector<64x256xf32>
    %cst_27 = arith.constant dense<0.000000e+00> : vector<8x256xf32>
    %46 = tpu.matmul %7, %45, %cst_27 {dimension_numbers = #tpu.dot_dimension_numbers<[1], [0], [0], [1], [0, 0, 1, 1], [], []>} : vector<8x64xf32>, vector<64x256xf32>, vector<8x256xf32> -> vector<8x256xf32>
    %47 = arith.addf %44, %46 : vector<8x256xf32>
    %c0_28 = arith.constant 0 : index
    %c0_29 = arith.constant 0 : index
    %48 = vector.load %arg6[%c0_28, %c0_29] : memref<1x256xf32, #tpu.memory_space<vmem>>, vector<1x256xf32>
    %49 = vector.broadcast %48 : vector<1x256xf32> to vector<8x256xf32>
    %50 = arith.addf %47, %49 : vector<8x256xf32>
    %51 = vector.extract_strided_slice %50 {offsets = [0, 0], sizes = [8, 64], strides = [1, 1]} : vector<8x256xf32> to vector<8x64xf32>
    %cst_30 = arith.constant 5.000000e-01 : f32
    %52 = vector.broadcast %cst_30 : f32 to vector<8x64xf32>
    %53 = arith.mulf %52, %51 : vector<8x64xf32>
    %54 = math.tanh %53 : vector<8x64xf32>
    %cst_31 = arith.constant 5.000000e-01 : f32
    %55 = vector.broadcast %cst_31 : f32 to vector<8x64xf32>
    %56 = arith.mulf %55, %54 : vector<8x64xf32>
    %cst_32 = arith.constant 5.000000e-01 : f32
    %57 = vector.broadcast %cst_32 : f32 to vector<8x64xf32>
    %58 = arith.addf %56, %57 : vector<8x64xf32>
    %59 = vector.extract_strided_slice %50 {offsets = [0, 64], sizes = [8, 64], strides = [1, 1]} : vector<8x256xf32> to vector<8x64xf32>
    %cst_33 = arith.constant 5.000000e-01 : f32
    %60 = vector.broadcast %cst_33 : f32 to vector<8x64xf32>
    %61 = arith.mulf %60, %59 : vector<8x64xf32>
    %62 = math.tanh %61 : vector<8x64xf32>
    %cst_34 = arith.constant 5.000000e-01 : f32
    %63 = vector.broadcast %cst_34 : f32 to vector<8x64xf32>
    %64 = arith.mulf %63, %62 : vector<8x64xf32>
    %cst_35 = arith.constant 5.000000e-01 : f32
    %65 = vector.broadcast %cst_35 : f32 to vector<8x64xf32>
    %66 = arith.addf %64, %65 : vector<8x64xf32>
    %67 = vector.extract_strided_slice %50 {offsets = [0, 128], sizes = [8, 64], strides = [1, 1]} : vector<8x256xf32> to vector<8x64xf32>
    %cst_36 = arith.constant 5.000000e-01 : f32
    %68 = vector.broadcast %cst_36 : f32 to vector<8x64xf32>
    %69 = arith.mulf %68, %67 : vector<8x64xf32>
    %70 = math.tanh %69 : vector<8x64xf32>
    %cst_37 = arith.constant 5.000000e-01 : f32
    %71 = vector.broadcast %cst_37 : f32 to vector<8x64xf32>
    %72 = arith.mulf %71, %70 : vector<8x64xf32>
    %cst_38 = arith.constant 5.000000e-01 : f32
    %73 = vector.broadcast %cst_38 : f32 to vector<8x64xf32>
    %74 = arith.addf %72, %73 : vector<8x64xf32>
    %75 = vector.extract_strided_slice %50 {offsets = [0, 192], sizes = [8, 64], strides = [1, 1]} : vector<8x256xf32> to vector<8x64xf32>
    %76 = math.tanh %75 : vector<8x64xf32>
    %77 = arith.mulf %58, %7 : vector<8x64xf32>
    %78 = arith.mulf %66, %76 : vector<8x64xf32>
    %79 = arith.addf %77, %78 : vector<8x64xf32>
    %80 = math.tanh %79 : vector<8x64xf32>
    %81 = arith.mulf %74, %80 : vector<8x64xf32>
    %c8 = arith.constant 8 : index
    %c0_39 = arith.constant 0 : index
    %82 = vector.load %arg12[%c8, %c0_39] : memref<64x256xf32, #tpu.memory_space<vmem>>, vector<8x256xf32>
    %c0_40 = arith.constant 0 : index
    %c0_41 = arith.constant 0 : index
    %83 = vector.load %arg2[%c0_40, %c0_41] : memref<64x256xf32, #tpu.memory_space<vmem>>, vector<64x256xf32>
    %cst_42 = arith.constant dense<0.000000e+00> : vector<8x256xf32>
    %84 = tpu.matmul %42, %83, %cst_42 {dimension_numbers = #tpu.dot_dimension_numbers<[1], [0], [0], [1], [0, 0, 1, 1], [], []>} : vector<8x64xf32>, vector<64x256xf32>, vector<8x256xf32> -> vector<8x256xf32>
    %85 = arith.addf %82, %84 : vector<8x256xf32>
    %86 = vector.extract_strided_slice %85 {offsets = [0, 0], sizes = [8, 64], strides = [1, 1]} : vector<8x256xf32> to vector<8x64xf32>
    %cst_43 = arith.constant 5.000000e-01 : f32
    %87 = vector.broadcast %cst_43 : f32 to vector<8x64xf32>
    %88 = arith.mulf %87, %86 : vector<8x64xf32>
    %89 = math.tanh %88 : vector<8x64xf32>
    %cst_44 = arith.constant 5.000000e-01 : f32
    %90 = vector.broadcast %cst_44 : f32 to vector<8x64xf32>
    %91 = arith.mulf %90, %89 : vector<8x64xf32>
    %cst_45 = arith.constant 5.000000e-01 : f32
    %92 = vector.broadcast %cst_45 : f32 to vector<8x64xf32>
    %93 = arith.addf %91, %92 : vector<8x64xf32>
    %94 = vector.extract_strided_slice %85 {offsets = [0, 64], sizes = [8, 64], strides = [1, 1]} : vector<8x256xf32> to vector<8x64xf32>
    %cst_46 = arith.constant 5.000000e-01 : f32
    %95 = vector.broadcast %cst_46 : f32 to vector<8x64xf32>
    %96 = arith.mulf %95, %94 : vector<8x64xf32>
    %97 = math.tanh %96 : vector<8x64xf32>
    %cst_47 = arith.constant 5.000000e-01 : f32
    %98 = vector.broadcast %cst_47 : f32 to vector<8x64xf32>
    %99 = arith.mulf %98, %97 : vector<8x64xf32>
    %cst_48 = arith.constant 5.000000e-01 : f32
    %100 = vector.broadcast %cst_48 : f32 to vector<8x64xf32>
    %101 = arith.addf %99, %100 : vector<8x64xf32>
    %102 = vector.extract_strided_slice %85 {offsets = [0, 128], sizes = [8, 64], strides = [1, 1]} : vector<8x256xf32> to vector<8x64xf32>
    %cst_49 = arith.constant 5.000000e-01 : f32
    %103 = vector.broadcast %cst_49 : f32 to vector<8x64xf32>
    %104 = arith.mulf %103, %102 : vector<8x64xf32>
    %105 = math.tanh %104 : vector<8x64xf32>
    %cst_50 = arith.constant 5.000000e-01 : f32
    %106 = vector.broadcast %cst_50 : f32 to vector<8x64xf32>
    %107 = arith.mulf %106, %105 : vector<8x64xf32>
    %cst_51 = arith.constant 5.000000e-01 : f32
    %108 = vector.broadcast %cst_51 : f32 to vector<8x64xf32>
    %109 = arith.addf %107, %108 : vector<8x64xf32>
    %110 = vector.extract_strided_slice %85 {offsets = [0, 192], sizes = [8, 64], strides = [1, 1]} : vector<8x256xf32> to vector<8x64xf32>
    %111 = math.tanh %110 : vector<8x64xf32>
    %112 = arith.mulf %93, %40 : vector<8x64xf32>
    %113 = arith.mulf %101, %111 : vector<8x64xf32>
    %114 = arith.addf %112, %113 : vector<8x64xf32>
    %115 = math.tanh %114 : vector<8x64xf32>
    %116 = arith.mulf %109, %115 : vector<8x64xf32>
    %c0_52 = arith.constant 0 : index
    %c0_53 = arith.constant 0 : index
    %117 = vector.load %arg4[%c0_52, %c0_53] : memref<64x256xf32, #tpu.memory_space<vmem>>, vector<64x256xf32>
    %cst_54 = arith.constant dense<0.000000e+00> : vector<8x256xf32>
    %118 = tpu.matmul %116, %117, %cst_54 {dimension_numbers = #tpu.dot_dimension_numbers<[1], [0], [0], [1], [0, 0, 1, 1], [], []>} : vector<8x64xf32>, vector<64x256xf32>, vector<8x256xf32> -> vector<8x256xf32>
    %c0_55 = arith.constant 0 : index
    %c0_56 = arith.constant 0 : index
    %119 = vector.load %arg5[%c0_55, %c0_56] : memref<64x256xf32, #tpu.memory_space<vmem>>, vector<64x256xf32>
    %cst_57 = arith.constant dense<0.000000e+00> : vector<8x256xf32>
    %120 = tpu.matmul %81, %119, %cst_57 {dimension_numbers = #tpu.dot_dimension_numbers<[1], [0], [0], [1], [0, 0, 1, 1], [], []>} : vector<8x64xf32>, vector<64x256xf32>, vector<8x256xf32> -> vector<8x256xf32>
    %121 = arith.addf %118, %120 : vector<8x256xf32>
    %c0_58 = arith.constant 0 : index
    %c0_59 = arith.constant 0 : index
    %122 = vector.load %arg6[%c0_58, %c0_59] : memref<1x256xf32, #tpu.memory_space<vmem>>, vector<1x256xf32>
    %123 = vector.broadcast %122 : vector<1x256xf32> to vector<8x256xf32>
    %124 = arith.addf %121, %123 : vector<8x256xf32>
    %125 = vector.extract_strided_slice %124 {offsets = [0, 0], sizes = [8, 64], strides = [1, 1]} : vector<8x256xf32> to vector<8x64xf32>
    %cst_60 = arith.constant 5.000000e-01 : f32
    %126 = vector.broadcast %cst_60 : f32 to vector<8x64xf32>
    %127 = arith.mulf %126, %125 : vector<8x64xf32>
    %128 = math.tanh %127 : vector<8x64xf32>
    %cst_61 = arith.constant 5.000000e-01 : f32
    %129 = vector.broadcast %cst_61 : f32 to vector<8x64xf32>
    %130 = arith.mulf %129, %128 : vector<8x64xf32>
    %cst_62 = arith.constant 5.000000e-01 : f32
    %131 = vector.broadcast %cst_62 : f32 to vector<8x64xf32>
    %132 = arith.addf %130, %131 : vector<8x64xf32>
    %133 = vector.extract_strided_slice %124 {offsets = [0, 64], sizes = [8, 64], strides = [1, 1]} : vector<8x256xf32> to vector<8x64xf32>
    %cst_63 = arith.constant 5.000000e-01 : f32
    %134 = vector.broadcast %cst_63 : f32 to vector<8x64xf32>
    %135 = arith.mulf %134, %133 : vector<8x64xf32>
    %136 = math.tanh %135 : vector<8x64xf32>
    %cst_64 = arith.constant 5.000000e-01 : f32
    %137 = vector.broadcast %cst_64 : f32 to vector<8x64xf32>
    %138 = arith.mulf %137, %136 : vector<8x64xf32>
    %cst_65 = arith.constant 5.000000e-01 : f32
    %139 = vector.broadcast %cst_65 : f32 to vector<8x64xf32>
    %140 = arith.addf %138, %139 : vector<8x64xf32>
    %141 = vector.extract_strided_slice %124 {offsets = [0, 128], sizes = [8, 64], strides = [1, 1]} : vector<8x256xf32> to vector<8x64xf32>
    %cst_66 = arith.constant 5.000000e-01 : f32
    %142 = vector.broadcast %cst_66 : f32 to vector<8x64xf32>
    %143 = arith.mulf %142, %141 : vector<8x64xf32>
    %144 = math.tanh %143 : vector<8x64xf32>
    %cst_67 = arith.constant 5.000000e-01 : f32
    %145 = vector.broadcast %cst_67 : f32 to vector<8x64xf32>
    %146 = arith.mulf %145, %144 : vector<8x64xf32>
    %cst_68 = arith.constant 5.000000e-01 : f32
    %147 = vector.broadcast %cst_68 : f32 to vector<8x64xf32>
    %148 = arith.addf %146, %147 : vector<8x64xf32>
    %149 = vector.extract_strided_slice %124 {offsets = [0, 192], sizes = [8, 64], strides = [1, 1]} : vector<8x256xf32> to vector<8x64xf32>
    %150 = math.tanh %149 : vector<8x64xf32>
    %151 = arith.mulf %132, %79 : vector<8x64xf32>
    %152 = arith.mulf %140, %150 : vector<8x64xf32>
    %153 = arith.addf %151, %152 : vector<8x64xf32>
    %154 = math.tanh %153 : vector<8x64xf32>
    %155 = arith.mulf %148, %154 : vector<8x64xf32>
    %c16 = arith.constant 16 : index
    %c0_69 = arith.constant 0 : index
    %156 = vector.load %arg12[%c16, %c0_69] : memref<64x256xf32, #tpu.memory_space<vmem>>, vector<8x256xf32>
    %c0_70 = arith.constant 0 : index
    %c0_71 = arith.constant 0 : index
    %157 = vector.load %arg2[%c0_70, %c0_71] : memref<64x256xf32, #tpu.memory_space<vmem>>, vector<64x256xf32>
    %cst_72 = arith.constant dense<0.000000e+00> : vector<8x256xf32>
    %158 = tpu.matmul %116, %157, %cst_72 {dimension_numbers = #tpu.dot_dimension_numbers<[1], [0], [0], [1], [0, 0, 1, 1], [], []>} : vector<8x64xf32>, vector<64x256xf32>, vector<8x256xf32> -> vector<8x256xf32>
    %159 = arith.addf %156, %158 : vector<8x256xf32>
    %160 = vector.extract_strided_slice %159 {offsets = [0, 0], sizes = [8, 64], strides = [1, 1]} : vector<8x256xf32> to vector<8x64xf32>
    %cst_73 = arith.constant 5.000000e-01 : f32
    %161 = vector.broadcast %cst_73 : f32 to vector<8x64xf32>
    %162 = arith.mulf %161, %160 : vector<8x64xf32>
    %163 = math.tanh %162 : vector<8x64xf32>
    %cst_74 = arith.constant 5.000000e-01 : f32
    %164 = vector.broadcast %cst_74 : f32 to vector<8x64xf32>
    %165 = arith.mulf %164, %163 : vector<8x64xf32>
    %cst_75 = arith.constant 5.000000e-01 : f32
    %166 = vector.broadcast %cst_75 : f32 to vector<8x64xf32>
    %167 = arith.addf %165, %166 : vector<8x64xf32>
    %168 = vector.extract_strided_slice %159 {offsets = [0, 64], sizes = [8, 64], strides = [1, 1]} : vector<8x256xf32> to vector<8x64xf32>
    %cst_76 = arith.constant 5.000000e-01 : f32
    %169 = vector.broadcast %cst_76 : f32 to vector<8x64xf32>
    %170 = arith.mulf %169, %168 : vector<8x64xf32>
    %171 = math.tanh %170 : vector<8x64xf32>
    %cst_77 = arith.constant 5.000000e-01 : f32
    %172 = vector.broadcast %cst_77 : f32 to vector<8x64xf32>
    %173 = arith.mulf %172, %171 : vector<8x64xf32>
    %cst_78 = arith.constant 5.000000e-01 : f32
    %174 = vector.broadcast %cst_78 : f32 to vector<8x64xf32>
    %175 = arith.addf %173, %174 : vector<8x64xf32>
    %176 = vector.extract_strided_slice %159 {offsets = [0, 128], sizes = [8, 64], strides = [1, 1]} : vector<8x256xf32> to vector<8x64xf32>
    %cst_79 = arith.constant 5.000000e-01 : f32
    %177 = vector.broadcast %cst_79 : f32 to vector<8x64xf32>
    %178 = arith.mulf %177, %176 : vector<8x64xf32>
    %179 = math.tanh %178 : vector<8x64xf32>
    %cst_80 = arith.constant 5.000000e-01 : f32
    %180 = vector.broadcast %cst_80 : f32 to vector<8x64xf32>
    %181 = arith.mulf %180, %179 : vector<8x64xf32>
    %cst_81 = arith.constant 5.000000e-01 : f32
    %182 = vector.broadcast %cst_81 : f32 to vector<8x64xf32>
    %183 = arith.addf %181, %182 : vector<8x64xf32>
    %184 = vector.extract_strided_slice %159 {offsets = [0, 192], sizes = [8, 64], strides = [1, 1]} : vector<8x256xf32> to vector<8x64xf32>
    %185 = math.tanh %184 : vector<8x64xf32>
    %186 = arith.mulf %167, %114 : vector<8x64xf32>
    %187 = arith.mulf %175, %185 : vector<8x64xf32>
    %188 = arith.addf %186, %187 : vector<8x64xf32>
    %189 = math.tanh %188 : vector<8x64xf32>
    %190 = arith.mulf %183, %189 : vector<8x64xf32>
    %c0_82 = arith.constant 0 : index
    %c0_83 = arith.constant 0 : index
    %191 = vector.load %arg4[%c0_82, %c0_83] : memref<64x256xf32, #tpu.memory_space<vmem>>, vector<64x256xf32>
    %cst_84 = arith.constant dense<0.000000e+00> : vector<8x256xf32>
    %192 = tpu.matmul %190, %191, %cst_84 {dimension_numbers = #tpu.dot_dimension_numbers<[1], [0], [0], [1], [0, 0, 1, 1], [], []>} : vector<8x64xf32>, vector<64x256xf32>, vector<8x256xf32> -> vector<8x256xf32>
    %c0_85 = arith.constant 0 : index
    %c0_86 = arith.constant 0 : index
    %193 = vector.load %arg5[%c0_85, %c0_86] : memref<64x256xf32, #tpu.memory_space<vmem>>, vector<64x256xf32>
    %cst_87 = arith.constant dense<0.000000e+00> : vector<8x256xf32>
    %194 = tpu.matmul %155, %193, %cst_87 {dimension_numbers = #tpu.dot_dimension_numbers<[1], [0], [0], [1], [0, 0, 1, 1], [], []>} : vector<8x64xf32>, vector<64x256xf32>, vector<8x256xf32> -> vector<8x256xf32>
    %195 = arith.addf %192, %194 : vector<8x256xf32>
    %c0_88 = arith.constant 0 : index
    %c0_89 = arith.constant 0 : index
    %196 = vector.load %arg6[%c0_88, %c0_89] : memref<1x256xf32, #tpu.memory_space<vmem>>, vector<1x256xf32>
    %197 = vector.broadcast %196 : vector<1x256xf32> to vector<8x256xf32>
    %198 = arith.addf %195, %197 : vector<8x256xf32>
    %199 = vector.extract_strided_slice %198 {offsets = [0, 0], sizes = [8, 64], strides = [1, 1]} : vector<8x256xf32> to vector<8x64xf32>
    %cst_90 = arith.constant 5.000000e-01 : f32
    %200 = vector.broadcast %cst_90 : f32 to vector<8x64xf32>
    %201 = arith.mulf %200, %199 : vector<8x64xf32>
    %202 = math.tanh %201 : vector<8x64xf32>
    %cst_91 = arith.constant 5.000000e-01 : f32
    %203 = vector.broadcast %cst_91 : f32 to vector<8x64xf32>
    %204 = arith.mulf %203, %202 : vector<8x64xf32>
    %cst_92 = arith.constant 5.000000e-01 : f32
    %205 = vector.broadcast %cst_92 : f32 to vector<8x64xf32>
    %206 = arith.addf %204, %205 : vector<8x64xf32>
    %207 = vector.extract_strided_slice %198 {offsets = [0, 64], sizes = [8, 64], strides = [1, 1]} : vector<8x256xf32> to vector<8x64xf32>
    %cst_93 = arith.constant 5.000000e-01 : f32
    %208 = vector.broadcast %cst_93 : f32 to vector<8x64xf32>
    %209 = arith.mulf %208, %207 : vector<8x64xf32>
    %210 = math.tanh %209 : vector<8x64xf32>
    %cst_94 = arith.constant 5.000000e-01 : f32
    %211 = vector.broadcast %cst_94 : f32 to vector<8x64xf32>
    %212 = arith.mulf %211, %210 : vector<8x64xf32>
    %cst_95 = arith.constant 5.000000e-01 : f32
    %213 = vector.broadcast %cst_95 : f32 to vector<8x64xf32>
    %214 = arith.addf %212, %213 : vector<8x64xf32>
    %215 = vector.extract_strided_slice %198 {offsets = [0, 128], sizes = [8, 64], strides = [1, 1]} : vector<8x256xf32> to vector<8x64xf32>
    %cst_96 = arith.constant 5.000000e-01 : f32
    %216 = vector.broadcast %cst_96 : f32 to vector<8x64xf32>
    %217 = arith.mulf %216, %215 : vector<8x64xf32>
    %218 = math.tanh %217 : vector<8x64xf32>
    %cst_97 = arith.constant 5.000000e-01 : f32
    %219 = vector.broadcast %cst_97 : f32 to vector<8x64xf32>
    %220 = arith.mulf %219, %218 : vector<8x64xf32>
    %cst_98 = arith.constant 5.000000e-01 : f32
    %221 = vector.broadcast %cst_98 : f32 to vector<8x64xf32>
    %222 = arith.addf %220, %221 : vector<8x64xf32>
    %223 = vector.extract_strided_slice %198 {offsets = [0, 192], sizes = [8, 64], strides = [1, 1]} : vector<8x256xf32> to vector<8x64xf32>
    %224 = math.tanh %223 : vector<8x64xf32>
    %225 = arith.mulf %206, %153 : vector<8x64xf32>
    %226 = arith.mulf %214, %224 : vector<8x64xf32>
    %227 = arith.addf %225, %226 : vector<8x64xf32>
    %228 = math.tanh %227 : vector<8x64xf32>
    %229 = arith.mulf %222, %228 : vector<8x64xf32>
    %c24 = arith.constant 24 : index
    %c0_99 = arith.constant 0 : index
    %230 = vector.load %arg12[%c24, %c0_99] : memref<64x256xf32, #tpu.memory_space<vmem>>, vector<8x256xf32>
    %c0_100 = arith.constant 0 : index
    %c0_101 = arith.constant 0 : index
    %231 = vector.load %arg2[%c0_100, %c0_101] : memref<64x256xf32, #tpu.memory_space<vmem>>, vector<64x256xf32>
    %cst_102 = arith.constant dense<0.000000e+00> : vector<8x256xf32>
    %232 = tpu.matmul %190, %231, %cst_102 {dimension_numbers = #tpu.dot_dimension_numbers<[1], [0], [0], [1], [0, 0, 1, 1], [], []>} : vector<8x64xf32>, vector<64x256xf32>, vector<8x256xf32> -> vector<8x256xf32>
    %233 = arith.addf %230, %232 : vector<8x256xf32>
    %234 = vector.extract_strided_slice %233 {offsets = [0, 0], sizes = [8, 64], strides = [1, 1]} : vector<8x256xf32> to vector<8x64xf32>
    %cst_103 = arith.constant 5.000000e-01 : f32
    %235 = vector.broadcast %cst_103 : f32 to vector<8x64xf32>
    %236 = arith.mulf %235, %234 : vector<8x64xf32>
    %237 = math.tanh %236 : vector<8x64xf32>
    %cst_104 = arith.constant 5.000000e-01 : f32
    %238 = vector.broadcast %cst_104 : f32 to vector<8x64xf32>
    %239 = arith.mulf %238, %237 : vector<8x64xf32>
    %cst_105 = arith.constant 5.000000e-01 : f32
    %240 = vector.broadcast %cst_105 : f32 to vector<8x64xf32>
    %241 = arith.addf %239, %240 : vector<8x64xf32>
    %242 = vector.extract_strided_slice %233 {offsets = [0, 64], sizes = [8, 64], strides = [1, 1]} : vector<8x256xf32> to vector<8x64xf32>
    %cst_106 = arith.constant 5.000000e-01 : f32
    %243 = vector.broadcast %cst_106 : f32 to vector<8x64xf32>
    %244 = arith.mulf %243, %242 : vector<8x64xf32>
    %245 = math.tanh %244 : vector<8x64xf32>
    %cst_107 = arith.constant 5.000000e-01 : f32
    %246 = vector.broadcast %cst_107 : f32 to vector<8x64xf32>
    %247 = arith.mulf %246, %245 : vector<8x64xf32>
    %cst_108 = arith.constant 5.000000e-01 : f32
    %248 = vector.broadcast %cst_108 : f32 to vector<8x64xf32>
    %249 = arith.addf %247, %248 : vector<8x64xf32>
    %250 = vector.extract_strided_slice %233 {offsets = [0, 128], sizes = [8, 64], strides = [1, 1]} : vector<8x256xf32> to vector<8x64xf32>
    %cst_109 = arith.constant 5.000000e-01 : f32
    %251 = vector.broadcast %cst_109 : f32 to vector<8x64xf32>
    %252 = arith.mulf %251, %250 : vector<8x64xf32>
    %253 = math.tanh %252 : vector<8x64xf32>
    %cst_110 = arith.constant 5.000000e-01 : f32
    %254 = vector.broadcast %cst_110 : f32 to vector<8x64xf32>
    %255 = arith.mulf %254, %253 : vector<8x64xf32>
    %cst_111 = arith.constant 5.000000e-01 : f32
    %256 = vector.broadcast %cst_111 : f32 to vector<8x64xf32>
    %257 = arith.addf %255, %256 : vector<8x64xf32>
    %258 = vector.extract_strided_slice %233 {offsets = [0, 192], sizes = [8, 64], strides = [1, 1]} : vector<8x256xf32> to vector<8x64xf32>
    %259 = math.tanh %258 : vector<8x64xf32>
    %260 = arith.mulf %241, %188 : vector<8x64xf32>
    %261 = arith.mulf %249, %259 : vector<8x64xf32>
    %262 = arith.addf %260, %261 : vector<8x64xf32>
    %263 = math.tanh %262 : vector<8x64xf32>
    %264 = arith.mulf %257, %263 : vector<8x64xf32>
    %c0_112 = arith.constant 0 : index
    %c0_113 = arith.constant 0 : index
    %265 = vector.load %arg4[%c0_112, %c0_113] : memref<64x256xf32, #tpu.memory_space<vmem>>, vector<64x256xf32>
    %cst_114 = arith.constant dense<0.000000e+00> : vector<8x256xf32>
    %266 = tpu.matmul %264, %265, %cst_114 {dimension_numbers = #tpu.dot_dimension_numbers<[1], [0], [0], [1], [0, 0, 1, 1], [], []>} : vector<8x64xf32>, vector<64x256xf32>, vector<8x256xf32> -> vector<8x256xf32>
    %c0_115 = arith.constant 0 : index
    %c0_116 = arith.constant 0 : index
    %267 = vector.load %arg5[%c0_115, %c0_116] : memref<64x256xf32, #tpu.memory_space<vmem>>, vector<64x256xf32>
    %cst_117 = arith.constant dense<0.000000e+00> : vector<8x256xf32>
    %268 = tpu.matmul %229, %267, %cst_117 {dimension_numbers = #tpu.dot_dimension_numbers<[1], [0], [0], [1], [0, 0, 1, 1], [], []>} : vector<8x64xf32>, vector<64x256xf32>, vector<8x256xf32> -> vector<8x256xf32>
    %269 = arith.addf %266, %268 : vector<8x256xf32>
    %c0_118 = arith.constant 0 : index
    %c0_119 = arith.constant 0 : index
    %270 = vector.load %arg6[%c0_118, %c0_119] : memref<1x256xf32, #tpu.memory_space<vmem>>, vector<1x256xf32>
    %271 = vector.broadcast %270 : vector<1x256xf32> to vector<8x256xf32>
    %272 = arith.addf %269, %271 : vector<8x256xf32>
    %273 = vector.extract_strided_slice %272 {offsets = [0, 0], sizes = [8, 64], strides = [1, 1]} : vector<8x256xf32> to vector<8x64xf32>
    %cst_120 = arith.constant 5.000000e-01 : f32
    %274 = vector.broadcast %cst_120 : f32 to vector<8x64xf32>
    %275 = arith.mulf %274, %273 : vector<8x64xf32>
    %276 = math.tanh %275 : vector<8x64xf32>
    %cst_121 = arith.constant 5.000000e-01 : f32
    %277 = vector.broadcast %cst_121 : f32 to vector<8x64xf32>
    %278 = arith.mulf %277, %276 : vector<8x64xf32>
    %cst_122 = arith.constant 5.000000e-01 : f32
    %279 = vector.broadcast %cst_122 : f32 to vector<8x64xf32>
    %280 = arith.addf %278, %279 : vector<8x64xf32>
    %281 = vector.extract_strided_slice %272 {offsets = [0, 64], sizes = [8, 64], strides = [1, 1]} : vector<8x256xf32> to vector<8x64xf32>
    %cst_123 = arith.constant 5.000000e-01 : f32
    %282 = vector.broadcast %cst_123 : f32 to vector<8x64xf32>
    %283 = arith.mulf %282, %281 : vector<8x64xf32>
    %284 = math.tanh %283 : vector<8x64xf32>
    %cst_124 = arith.constant 5.000000e-01 : f32
    %285 = vector.broadcast %cst_124 : f32 to vector<8x64xf32>
    %286 = arith.mulf %285, %284 : vector<8x64xf32>
    %cst_125 = arith.constant 5.000000e-01 : f32
    %287 = vector.broadcast %cst_125 : f32 to vector<8x64xf32>
    %288 = arith.addf %286, %287 : vector<8x64xf32>
    %289 = vector.extract_strided_slice %272 {offsets = [0, 128], sizes = [8, 64], strides = [1, 1]} : vector<8x256xf32> to vector<8x64xf32>
    %cst_126 = arith.constant 5.000000e-01 : f32
    %290 = vector.broadcast %cst_126 : f32 to vector<8x64xf32>
    %291 = arith.mulf %290, %289 : vector<8x64xf32>
    %292 = math.tanh %291 : vector<8x64xf32>
    %cst_127 = arith.constant 5.000000e-01 : f32
    %293 = vector.broadcast %cst_127 : f32 to vector<8x64xf32>
    %294 = arith.mulf %293, %292 : vector<8x64xf32>
    %cst_128 = arith.constant 5.000000e-01 : f32
    %295 = vector.broadcast %cst_128 : f32 to vector<8x64xf32>
    %296 = arith.addf %294, %295 : vector<8x64xf32>
    %297 = vector.extract_strided_slice %272 {offsets = [0, 192], sizes = [8, 64], strides = [1, 1]} : vector<8x256xf32> to vector<8x64xf32>
    %298 = math.tanh %297 : vector<8x64xf32>
    %299 = arith.mulf %280, %227 : vector<8x64xf32>
    %300 = arith.mulf %288, %298 : vector<8x64xf32>
    %301 = arith.addf %299, %300 : vector<8x64xf32>
    %302 = math.tanh %301 : vector<8x64xf32>
    %303 = arith.mulf %296, %302 : vector<8x64xf32>
    %c32 = arith.constant 32 : index
    %c0_129 = arith.constant 0 : index
    %304 = vector.load %arg12[%c32, %c0_129] : memref<64x256xf32, #tpu.memory_space<vmem>>, vector<8x256xf32>
    %c0_130 = arith.constant 0 : index
    %c0_131 = arith.constant 0 : index
    %305 = vector.load %arg2[%c0_130, %c0_131] : memref<64x256xf32, #tpu.memory_space<vmem>>, vector<64x256xf32>
    %cst_132 = arith.constant dense<0.000000e+00> : vector<8x256xf32>
    %306 = tpu.matmul %264, %305, %cst_132 {dimension_numbers = #tpu.dot_dimension_numbers<[1], [0], [0], [1], [0, 0, 1, 1], [], []>} : vector<8x64xf32>, vector<64x256xf32>, vector<8x256xf32> -> vector<8x256xf32>
    %307 = arith.addf %304, %306 : vector<8x256xf32>
    %308 = vector.extract_strided_slice %307 {offsets = [0, 0], sizes = [8, 64], strides = [1, 1]} : vector<8x256xf32> to vector<8x64xf32>
    %cst_133 = arith.constant 5.000000e-01 : f32
    %309 = vector.broadcast %cst_133 : f32 to vector<8x64xf32>
    %310 = arith.mulf %309, %308 : vector<8x64xf32>
    %311 = math.tanh %310 : vector<8x64xf32>
    %cst_134 = arith.constant 5.000000e-01 : f32
    %312 = vector.broadcast %cst_134 : f32 to vector<8x64xf32>
    %313 = arith.mulf %312, %311 : vector<8x64xf32>
    %cst_135 = arith.constant 5.000000e-01 : f32
    %314 = vector.broadcast %cst_135 : f32 to vector<8x64xf32>
    %315 = arith.addf %313, %314 : vector<8x64xf32>
    %316 = vector.extract_strided_slice %307 {offsets = [0, 64], sizes = [8, 64], strides = [1, 1]} : vector<8x256xf32> to vector<8x64xf32>
    %cst_136 = arith.constant 5.000000e-01 : f32
    %317 = vector.broadcast %cst_136 : f32 to vector<8x64xf32>
    %318 = arith.mulf %317, %316 : vector<8x64xf32>
    %319 = math.tanh %318 : vector<8x64xf32>
    %cst_137 = arith.constant 5.000000e-01 : f32
    %320 = vector.broadcast %cst_137 : f32 to vector<8x64xf32>
    %321 = arith.mulf %320, %319 : vector<8x64xf32>
    %cst_138 = arith.constant 5.000000e-01 : f32
    %322 = vector.broadcast %cst_138 : f32 to vector<8x64xf32>
    %323 = arith.addf %321, %322 : vector<8x64xf32>
    %324 = vector.extract_strided_slice %307 {offsets = [0, 128], sizes = [8, 64], strides = [1, 1]} : vector<8x256xf32> to vector<8x64xf32>
    %cst_139 = arith.constant 5.000000e-01 : f32
    %325 = vector.broadcast %cst_139 : f32 to vector<8x64xf32>
    %326 = arith.mulf %325, %324 : vector<8x64xf32>
    %327 = math.tanh %326 : vector<8x64xf32>
    %cst_140 = arith.constant 5.000000e-01 : f32
    %328 = vector.broadcast %cst_140 : f32 to vector<8x64xf32>
    %329 = arith.mulf %328, %327 : vector<8x64xf32>
    %cst_141 = arith.constant 5.000000e-01 : f32
    %330 = vector.broadcast %cst_141 : f32 to vector<8x64xf32>
    %331 = arith.addf %329, %330 : vector<8x64xf32>
    %332 = vector.extract_strided_slice %307 {offsets = [0, 192], sizes = [8, 64], strides = [1, 1]} : vector<8x256xf32> to vector<8x64xf32>
    %333 = math.tanh %332 : vector<8x64xf32>
    %334 = arith.mulf %315, %262 : vector<8x64xf32>
    %335 = arith.mulf %323, %333 : vector<8x64xf32>
    %336 = arith.addf %334, %335 : vector<8x64xf32>
    %337 = math.tanh %336 : vector<8x64xf32>
    %338 = arith.mulf %331, %337 : vector<8x64xf32>
    %c0_142 = arith.constant 0 : index
    %c0_143 = arith.constant 0 : index
    %339 = vector.load %arg4[%c0_142, %c0_143] : memref<64x256xf32, #tpu.memory_space<vmem>>, vector<64x256xf32>
    %cst_144 = arith.constant dense<0.000000e+00> : vector<8x256xf32>
    %340 = tpu.matmul %338, %339, %cst_144 {dimension_numbers = #tpu.dot_dimension_numbers<[1], [0], [0], [1], [0, 0, 1, 1], [], []>} : vector<8x64xf32>, vector<64x256xf32>, vector<8x256xf32> -> vector<8x256xf32>
    %c0_145 = arith.constant 0 : index
    %c0_146 = arith.constant 0 : index
    %341 = vector.load %arg5[%c0_145, %c0_146] : memref<64x256xf32, #tpu.memory_space<vmem>>, vector<64x256xf32>
    %cst_147 = arith.constant dense<0.000000e+00> : vector<8x256xf32>
    %342 = tpu.matmul %303, %341, %cst_147 {dimension_numbers = #tpu.dot_dimension_numbers<[1], [0], [0], [1], [0, 0, 1, 1], [], []>} : vector<8x64xf32>, vector<64x256xf32>, vector<8x256xf32> -> vector<8x256xf32>
    %343 = arith.addf %340, %342 : vector<8x256xf32>
    %c0_148 = arith.constant 0 : index
    %c0_149 = arith.constant 0 : index
    %344 = vector.load %arg6[%c0_148, %c0_149] : memref<1x256xf32, #tpu.memory_space<vmem>>, vector<1x256xf32>
    %345 = vector.broadcast %344 : vector<1x256xf32> to vector<8x256xf32>
    %346 = arith.addf %343, %345 : vector<8x256xf32>
    %347 = vector.extract_strided_slice %346 {offsets = [0, 0], sizes = [8, 64], strides = [1, 1]} : vector<8x256xf32> to vector<8x64xf32>
    %cst_150 = arith.constant 5.000000e-01 : f32
    %348 = vector.broadcast %cst_150 : f32 to vector<8x64xf32>
    %349 = arith.mulf %348, %347 : vector<8x64xf32>
    %350 = math.tanh %349 : vector<8x64xf32>
    %cst_151 = arith.constant 5.000000e-01 : f32
    %351 = vector.broadcast %cst_151 : f32 to vector<8x64xf32>
    %352 = arith.mulf %351, %350 : vector<8x64xf32>
    %cst_152 = arith.constant 5.000000e-01 : f32
    %353 = vector.broadcast %cst_152 : f32 to vector<8x64xf32>
    %354 = arith.addf %352, %353 : vector<8x64xf32>
    %355 = vector.extract_strided_slice %346 {offsets = [0, 64], sizes = [8, 64], strides = [1, 1]} : vector<8x256xf32> to vector<8x64xf32>
    %cst_153 = arith.constant 5.000000e-01 : f32
    %356 = vector.broadcast %cst_153 : f32 to vector<8x64xf32>
    %357 = arith.mulf %356, %355 : vector<8x64xf32>
    %358 = math.tanh %357 : vector<8x64xf32>
    %cst_154 = arith.constant 5.000000e-01 : f32
    %359 = vector.broadcast %cst_154 : f32 to vector<8x64xf32>
    %360 = arith.mulf %359, %358 : vector<8x64xf32>
    %cst_155 = arith.constant 5.000000e-01 : f32
    %361 = vector.broadcast %cst_155 : f32 to vector<8x64xf32>
    %362 = arith.addf %360, %361 : vector<8x64xf32>
    %363 = vector.extract_strided_slice %346 {offsets = [0, 128], sizes = [8, 64], strides = [1, 1]} : vector<8x256xf32> to vector<8x64xf32>
    %cst_156 = arith.constant 5.000000e-01 : f32
    %364 = vector.broadcast %cst_156 : f32 to vector<8x64xf32>
    %365 = arith.mulf %364, %363 : vector<8x64xf32>
    %366 = math.tanh %365 : vector<8x64xf32>
    %cst_157 = arith.constant 5.000000e-01 : f32
    %367 = vector.broadcast %cst_157 : f32 to vector<8x64xf32>
    %368 = arith.mulf %367, %366 : vector<8x64xf32>
    %cst_158 = arith.constant 5.000000e-01 : f32
    %369 = vector.broadcast %cst_158 : f32 to vector<8x64xf32>
    %370 = arith.addf %368, %369 : vector<8x64xf32>
    %371 = vector.extract_strided_slice %346 {offsets = [0, 192], sizes = [8, 64], strides = [1, 1]} : vector<8x256xf32> to vector<8x64xf32>
    %372 = math.tanh %371 : vector<8x64xf32>
    %373 = arith.mulf %354, %301 : vector<8x64xf32>
    %374 = arith.mulf %362, %372 : vector<8x64xf32>
    %375 = arith.addf %373, %374 : vector<8x64xf32>
    %376 = math.tanh %375 : vector<8x64xf32>
    %377 = arith.mulf %370, %376 : vector<8x64xf32>
    %c40 = arith.constant 40 : index
    %c0_159 = arith.constant 0 : index
    %378 = vector.load %arg12[%c40, %c0_159] : memref<64x256xf32, #tpu.memory_space<vmem>>, vector<8x256xf32>
    %c0_160 = arith.constant 0 : index
    %c0_161 = arith.constant 0 : index
    %379 = vector.load %arg2[%c0_160, %c0_161] : memref<64x256xf32, #tpu.memory_space<vmem>>, vector<64x256xf32>
    %cst_162 = arith.constant dense<0.000000e+00> : vector<8x256xf32>
    %380 = tpu.matmul %338, %379, %cst_162 {dimension_numbers = #tpu.dot_dimension_numbers<[1], [0], [0], [1], [0, 0, 1, 1], [], []>} : vector<8x64xf32>, vector<64x256xf32>, vector<8x256xf32> -> vector<8x256xf32>
    %381 = arith.addf %378, %380 : vector<8x256xf32>
    %382 = vector.extract_strided_slice %381 {offsets = [0, 0], sizes = [8, 64], strides = [1, 1]} : vector<8x256xf32> to vector<8x64xf32>
    %cst_163 = arith.constant 5.000000e-01 : f32
    %383 = vector.broadcast %cst_163 : f32 to vector<8x64xf32>
    %384 = arith.mulf %383, %382 : vector<8x64xf32>
    %385 = math.tanh %384 : vector<8x64xf32>
    %cst_164 = arith.constant 5.000000e-01 : f32
    %386 = vector.broadcast %cst_164 : f32 to vector<8x64xf32>
    %387 = arith.mulf %386, %385 : vector<8x64xf32>
    %cst_165 = arith.constant 5.000000e-01 : f32
    %388 = vector.broadcast %cst_165 : f32 to vector<8x64xf32>
    %389 = arith.addf %387, %388 : vector<8x64xf32>
    %390 = vector.extract_strided_slice %381 {offsets = [0, 64], sizes = [8, 64], strides = [1, 1]} : vector<8x256xf32> to vector<8x64xf32>
    %cst_166 = arith.constant 5.000000e-01 : f32
    %391 = vector.broadcast %cst_166 : f32 to vector<8x64xf32>
    %392 = arith.mulf %391, %390 : vector<8x64xf32>
    %393 = math.tanh %392 : vector<8x64xf32>
    %cst_167 = arith.constant 5.000000e-01 : f32
    %394 = vector.broadcast %cst_167 : f32 to vector<8x64xf32>
    %395 = arith.mulf %394, %393 : vector<8x64xf32>
    %cst_168 = arith.constant 5.000000e-01 : f32
    %396 = vector.broadcast %cst_168 : f32 to vector<8x64xf32>
    %397 = arith.addf %395, %396 : vector<8x64xf32>
    %398 = vector.extract_strided_slice %381 {offsets = [0, 128], sizes = [8, 64], strides = [1, 1]} : vector<8x256xf32> to vector<8x64xf32>
    %cst_169 = arith.constant 5.000000e-01 : f32
    %399 = vector.broadcast %cst_169 : f32 to vector<8x64xf32>
    %400 = arith.mulf %399, %398 : vector<8x64xf32>
    %401 = math.tanh %400 : vector<8x64xf32>
    %cst_170 = arith.constant 5.000000e-01 : f32
    %402 = vector.broadcast %cst_170 : f32 to vector<8x64xf32>
    %403 = arith.mulf %402, %401 : vector<8x64xf32>
    %cst_171 = arith.constant 5.000000e-01 : f32
    %404 = vector.broadcast %cst_171 : f32 to vector<8x64xf32>
    %405 = arith.addf %403, %404 : vector<8x64xf32>
    %406 = vector.extract_strided_slice %381 {offsets = [0, 192], sizes = [8, 64], strides = [1, 1]} : vector<8x256xf32> to vector<8x64xf32>
    %407 = math.tanh %406 : vector<8x64xf32>
    %408 = arith.mulf %389, %336 : vector<8x64xf32>
    %409 = arith.mulf %397, %407 : vector<8x64xf32>
    %410 = arith.addf %408, %409 : vector<8x64xf32>
    %411 = math.tanh %410 : vector<8x64xf32>
    %412 = arith.mulf %405, %411 : vector<8x64xf32>
    %c0_172 = arith.constant 0 : index
    %c0_173 = arith.constant 0 : index
    %413 = vector.load %arg4[%c0_172, %c0_173] : memref<64x256xf32, #tpu.memory_space<vmem>>, vector<64x256xf32>
    %cst_174 = arith.constant dense<0.000000e+00> : vector<8x256xf32>
    %414 = tpu.matmul %412, %413, %cst_174 {dimension_numbers = #tpu.dot_dimension_numbers<[1], [0], [0], [1], [0, 0, 1, 1], [], []>} : vector<8x64xf32>, vector<64x256xf32>, vector<8x256xf32> -> vector<8x256xf32>
    %c0_175 = arith.constant 0 : index
    %c0_176 = arith.constant 0 : index
    %415 = vector.load %arg5[%c0_175, %c0_176] : memref<64x256xf32, #tpu.memory_space<vmem>>, vector<64x256xf32>
    %cst_177 = arith.constant dense<0.000000e+00> : vector<8x256xf32>
    %416 = tpu.matmul %377, %415, %cst_177 {dimension_numbers = #tpu.dot_dimension_numbers<[1], [0], [0], [1], [0, 0, 1, 1], [], []>} : vector<8x64xf32>, vector<64x256xf32>, vector<8x256xf32> -> vector<8x256xf32>
    %417 = arith.addf %414, %416 : vector<8x256xf32>
    %c0_178 = arith.constant 0 : index
    %c0_179 = arith.constant 0 : index
    %418 = vector.load %arg6[%c0_178, %c0_179] : memref<1x256xf32, #tpu.memory_space<vmem>>, vector<1x256xf32>
    %419 = vector.broadcast %418 : vector<1x256xf32> to vector<8x256xf32>
    %420 = arith.addf %417, %419 : vector<8x256xf32>
    %421 = vector.extract_strided_slice %420 {offsets = [0, 0], sizes = [8, 64], strides = [1, 1]} : vector<8x256xf32> to vector<8x64xf32>
    %cst_180 = arith.constant 5.000000e-01 : f32
    %422 = vector.broadcast %cst_180 : f32 to vector<8x64xf32>
    %423 = arith.mulf %422, %421 : vector<8x64xf32>
    %424 = math.tanh %423 : vector<8x64xf32>
    %cst_181 = arith.constant 5.000000e-01 : f32
    %425 = vector.broadcast %cst_181 : f32 to vector<8x64xf32>
    %426 = arith.mulf %425, %424 : vector<8x64xf32>
    %cst_182 = arith.constant 5.000000e-01 : f32
    %427 = vector.broadcast %cst_182 : f32 to vector<8x64xf32>
    %428 = arith.addf %426, %427 : vector<8x64xf32>
    %429 = vector.extract_strided_slice %420 {offsets = [0, 64], sizes = [8, 64], strides = [1, 1]} : vector<8x256xf32> to vector<8x64xf32>
    %cst_183 = arith.constant 5.000000e-01 : f32
    %430 = vector.broadcast %cst_183 : f32 to vector<8x64xf32>
    %431 = arith.mulf %430, %429 : vector<8x64xf32>
    %432 = math.tanh %431 : vector<8x64xf32>
    %cst_184 = arith.constant 5.000000e-01 : f32
    %433 = vector.broadcast %cst_184 : f32 to vector<8x64xf32>
    %434 = arith.mulf %433, %432 : vector<8x64xf32>
    %cst_185 = arith.constant 5.000000e-01 : f32
    %435 = vector.broadcast %cst_185 : f32 to vector<8x64xf32>
    %436 = arith.addf %434, %435 : vector<8x64xf32>
    %437 = vector.extract_strided_slice %420 {offsets = [0, 128], sizes = [8, 64], strides = [1, 1]} : vector<8x256xf32> to vector<8x64xf32>
    %cst_186 = arith.constant 5.000000e-01 : f32
    %438 = vector.broadcast %cst_186 : f32 to vector<8x64xf32>
    %439 = arith.mulf %438, %437 : vector<8x64xf32>
    %440 = math.tanh %439 : vector<8x64xf32>
    %cst_187 = arith.constant 5.000000e-01 : f32
    %441 = vector.broadcast %cst_187 : f32 to vector<8x64xf32>
    %442 = arith.mulf %441, %440 : vector<8x64xf32>
    %cst_188 = arith.constant 5.000000e-01 : f32
    %443 = vector.broadcast %cst_188 : f32 to vector<8x64xf32>
    %444 = arith.addf %442, %443 : vector<8x64xf32>
    %445 = vector.extract_strided_slice %420 {offsets = [0, 192], sizes = [8, 64], strides = [1, 1]} : vector<8x256xf32> to vector<8x64xf32>
    %446 = math.tanh %445 : vector<8x64xf32>
    %447 = arith.mulf %428, %375 : vector<8x64xf32>
    %448 = arith.mulf %436, %446 : vector<8x64xf32>
    %449 = arith.addf %447, %448 : vector<8x64xf32>
    %450 = math.tanh %449 : vector<8x64xf32>
    %451 = arith.mulf %444, %450 : vector<8x64xf32>
    %c48 = arith.constant 48 : index
    %c0_189 = arith.constant 0 : index
    %452 = vector.load %arg12[%c48, %c0_189] : memref<64x256xf32, #tpu.memory_space<vmem>>, vector<8x256xf32>
    %c0_190 = arith.constant 0 : index
    %c0_191 = arith.constant 0 : index
    %453 = vector.load %arg2[%c0_190, %c0_191] : memref<64x256xf32, #tpu.memory_space<vmem>>, vector<64x256xf32>
    %cst_192 = arith.constant dense<0.000000e+00> : vector<8x256xf32>
    %454 = tpu.matmul %412, %453, %cst_192 {dimension_numbers = #tpu.dot_dimension_numbers<[1], [0], [0], [1], [0, 0, 1, 1], [], []>} : vector<8x64xf32>, vector<64x256xf32>, vector<8x256xf32> -> vector<8x256xf32>
    %455 = arith.addf %452, %454 : vector<8x256xf32>
    %456 = vector.extract_strided_slice %455 {offsets = [0, 0], sizes = [8, 64], strides = [1, 1]} : vector<8x256xf32> to vector<8x64xf32>
    %cst_193 = arith.constant 5.000000e-01 : f32
    %457 = vector.broadcast %cst_193 : f32 to vector<8x64xf32>
    %458 = arith.mulf %457, %456 : vector<8x64xf32>
    %459 = math.tanh %458 : vector<8x64xf32>
    %cst_194 = arith.constant 5.000000e-01 : f32
    %460 = vector.broadcast %cst_194 : f32 to vector<8x64xf32>
    %461 = arith.mulf %460, %459 : vector<8x64xf32>
    %cst_195 = arith.constant 5.000000e-01 : f32
    %462 = vector.broadcast %cst_195 : f32 to vector<8x64xf32>
    %463 = arith.addf %461, %462 : vector<8x64xf32>
    %464 = vector.extract_strided_slice %455 {offsets = [0, 64], sizes = [8, 64], strides = [1, 1]} : vector<8x256xf32> to vector<8x64xf32>
    %cst_196 = arith.constant 5.000000e-01 : f32
    %465 = vector.broadcast %cst_196 : f32 to vector<8x64xf32>
    %466 = arith.mulf %465, %464 : vector<8x64xf32>
    %467 = math.tanh %466 : vector<8x64xf32>
    %cst_197 = arith.constant 5.000000e-01 : f32
    %468 = vector.broadcast %cst_197 : f32 to vector<8x64xf32>
    %469 = arith.mulf %468, %467 : vector<8x64xf32>
    %cst_198 = arith.constant 5.000000e-01 : f32
    %470 = vector.broadcast %cst_198 : f32 to vector<8x64xf32>
    %471 = arith.addf %469, %470 : vector<8x64xf32>
    %472 = vector.extract_strided_slice %455 {offsets = [0, 128], sizes = [8, 64], strides = [1, 1]} : vector<8x256xf32> to vector<8x64xf32>
    %cst_199 = arith.constant 5.000000e-01 : f32
    %473 = vector.broadcast %cst_199 : f32 to vector<8x64xf32>
    %474 = arith.mulf %473, %472 : vector<8x64xf32>
    %475 = math.tanh %474 : vector<8x64xf32>
    %cst_200 = arith.constant 5.000000e-01 : f32
    %476 = vector.broadcast %cst_200 : f32 to vector<8x64xf32>
    %477 = arith.mulf %476, %475 : vector<8x64xf32>
    %cst_201 = arith.constant 5.000000e-01 : f32
    %478 = vector.broadcast %cst_201 : f32 to vector<8x64xf32>
    %479 = arith.addf %477, %478 : vector<8x64xf32>
    %480 = vector.extract_strided_slice %455 {offsets = [0, 192], sizes = [8, 64], strides = [1, 1]} : vector<8x256xf32> to vector<8x64xf32>
    %481 = math.tanh %480 : vector<8x64xf32>
    %482 = arith.mulf %463, %410 : vector<8x64xf32>
    %483 = arith.mulf %471, %481 : vector<8x64xf32>
    %484 = arith.addf %482, %483 : vector<8x64xf32>
    %485 = math.tanh %484 : vector<8x64xf32>
    %486 = arith.mulf %479, %485 : vector<8x64xf32>
    %c0_202 = arith.constant 0 : index
    %c0_203 = arith.constant 0 : index
    %487 = vector.load %arg4[%c0_202, %c0_203] : memref<64x256xf32, #tpu.memory_space<vmem>>, vector<64x256xf32>
    %cst_204 = arith.constant dense<0.000000e+00> : vector<8x256xf32>
    %488 = tpu.matmul %486, %487, %cst_204 {dimension_numbers = #tpu.dot_dimension_numbers<[1], [0], [0], [1], [0, 0, 1, 1], [], []>} : vector<8x64xf32>, vector<64x256xf32>, vector<8x256xf32> -> vector<8x256xf32>
    %c0_205 = arith.constant 0 : index
    %c0_206 = arith.constant 0 : index
    %489 = vector.load %arg5[%c0_205, %c0_206] : memref<64x256xf32, #tpu.memory_space<vmem>>, vector<64x256xf32>
    %cst_207 = arith.constant dense<0.000000e+00> : vector<8x256xf32>
    %490 = tpu.matmul %451, %489, %cst_207 {dimension_numbers = #tpu.dot_dimension_numbers<[1], [0], [0], [1], [0, 0, 1, 1], [], []>} : vector<8x64xf32>, vector<64x256xf32>, vector<8x256xf32> -> vector<8x256xf32>
    %491 = arith.addf %488, %490 : vector<8x256xf32>
    %c0_208 = arith.constant 0 : index
    %c0_209 = arith.constant 0 : index
    %492 = vector.load %arg6[%c0_208, %c0_209] : memref<1x256xf32, #tpu.memory_space<vmem>>, vector<1x256xf32>
    %493 = vector.broadcast %492 : vector<1x256xf32> to vector<8x256xf32>
    %494 = arith.addf %491, %493 : vector<8x256xf32>
    %495 = vector.extract_strided_slice %494 {offsets = [0, 0], sizes = [8, 64], strides = [1, 1]} : vector<8x256xf32> to vector<8x64xf32>
    %cst_210 = arith.constant 5.000000e-01 : f32
    %496 = vector.broadcast %cst_210 : f32 to vector<8x64xf32>
    %497 = arith.mulf %496, %495 : vector<8x64xf32>
    %498 = math.tanh %497 : vector<8x64xf32>
    %cst_211 = arith.constant 5.000000e-01 : f32
    %499 = vector.broadcast %cst_211 : f32 to vector<8x64xf32>
    %500 = arith.mulf %499, %498 : vector<8x64xf32>
    %cst_212 = arith.constant 5.000000e-01 : f32
    %501 = vector.broadcast %cst_212 : f32 to vector<8x64xf32>
    %502 = arith.addf %500, %501 : vector<8x64xf32>
    %503 = vector.extract_strided_slice %494 {offsets = [0, 64], sizes = [8, 64], strides = [1, 1]} : vector<8x256xf32> to vector<8x64xf32>
    %cst_213 = arith.constant 5.000000e-01 : f32
    %504 = vector.broadcast %cst_213 : f32 to vector<8x64xf32>
    %505 = arith.mulf %504, %503 : vector<8x64xf32>
    %506 = math.tanh %505 : vector<8x64xf32>
    %cst_214 = arith.constant 5.000000e-01 : f32
    %507 = vector.broadcast %cst_214 : f32 to vector<8x64xf32>
    %508 = arith.mulf %507, %506 : vector<8x64xf32>
    %cst_215 = arith.constant 5.000000e-01 : f32
    %509 = vector.broadcast %cst_215 : f32 to vector<8x64xf32>
    %510 = arith.addf %508, %509 : vector<8x64xf32>
    %511 = vector.extract_strided_slice %494 {offsets = [0, 128], sizes = [8, 64], strides = [1, 1]} : vector<8x256xf32> to vector<8x64xf32>
    %cst_216 = arith.constant 5.000000e-01 : f32
    %512 = vector.broadcast %cst_216 : f32 to vector<8x64xf32>
    %513 = arith.mulf %512, %511 : vector<8x64xf32>
    %514 = math.tanh %513 : vector<8x64xf32>
    %cst_217 = arith.constant 5.000000e-01 : f32
    %515 = vector.broadcast %cst_217 : f32 to vector<8x64xf32>
    %516 = arith.mulf %515, %514 : vector<8x64xf32>
    %cst_218 = arith.constant 5.000000e-01 : f32
    %517 = vector.broadcast %cst_218 : f32 to vector<8x64xf32>
    %518 = arith.addf %516, %517 : vector<8x64xf32>
    %519 = vector.extract_strided_slice %494 {offsets = [0, 192], sizes = [8, 64], strides = [1, 1]} : vector<8x256xf32> to vector<8x64xf32>
    %520 = math.tanh %519 : vector<8x64xf32>
    %521 = arith.mulf %502, %449 : vector<8x64xf32>
    %522 = arith.mulf %510, %520 : vector<8x64xf32>
    %523 = arith.addf %521, %522 : vector<8x64xf32>
    %524 = math.tanh %523 : vector<8x64xf32>
    %525 = arith.mulf %518, %524 : vector<8x64xf32>
    %c56 = arith.constant 56 : index
    %c0_219 = arith.constant 0 : index
    %526 = vector.load %arg12[%c56, %c0_219] : memref<64x256xf32, #tpu.memory_space<vmem>>, vector<8x256xf32>
    %c0_220 = arith.constant 0 : index
    %c0_221 = arith.constant 0 : index
    %527 = vector.load %arg2[%c0_220, %c0_221] : memref<64x256xf32, #tpu.memory_space<vmem>>, vector<64x256xf32>
    %cst_222 = arith.constant dense<0.000000e+00> : vector<8x256xf32>
    %528 = tpu.matmul %486, %527, %cst_222 {dimension_numbers = #tpu.dot_dimension_numbers<[1], [0], [0], [1], [0, 0, 1, 1], [], []>} : vector<8x64xf32>, vector<64x256xf32>, vector<8x256xf32> -> vector<8x256xf32>
    %529 = arith.addf %526, %528 : vector<8x256xf32>
    %530 = vector.extract_strided_slice %529 {offsets = [0, 0], sizes = [8, 64], strides = [1, 1]} : vector<8x256xf32> to vector<8x64xf32>
    %cst_223 = arith.constant 5.000000e-01 : f32
    %531 = vector.broadcast %cst_223 : f32 to vector<8x64xf32>
    %532 = arith.mulf %531, %530 : vector<8x64xf32>
    %533 = math.tanh %532 : vector<8x64xf32>
    %cst_224 = arith.constant 5.000000e-01 : f32
    %534 = vector.broadcast %cst_224 : f32 to vector<8x64xf32>
    %535 = arith.mulf %534, %533 : vector<8x64xf32>
    %cst_225 = arith.constant 5.000000e-01 : f32
    %536 = vector.broadcast %cst_225 : f32 to vector<8x64xf32>
    %537 = arith.addf %535, %536 : vector<8x64xf32>
    %538 = vector.extract_strided_slice %529 {offsets = [0, 64], sizes = [8, 64], strides = [1, 1]} : vector<8x256xf32> to vector<8x64xf32>
    %cst_226 = arith.constant 5.000000e-01 : f32
    %539 = vector.broadcast %cst_226 : f32 to vector<8x64xf32>
    %540 = arith.mulf %539, %538 : vector<8x64xf32>
    %541 = math.tanh %540 : vector<8x64xf32>
    %cst_227 = arith.constant 5.000000e-01 : f32
    %542 = vector.broadcast %cst_227 : f32 to vector<8x64xf32>
    %543 = arith.mulf %542, %541 : vector<8x64xf32>
    %cst_228 = arith.constant 5.000000e-01 : f32
    %544 = vector.broadcast %cst_228 : f32 to vector<8x64xf32>
    %545 = arith.addf %543, %544 : vector<8x64xf32>
    %546 = vector.extract_strided_slice %529 {offsets = [0, 128], sizes = [8, 64], strides = [1, 1]} : vector<8x256xf32> to vector<8x64xf32>
    %cst_229 = arith.constant 5.000000e-01 : f32
    %547 = vector.broadcast %cst_229 : f32 to vector<8x64xf32>
    %548 = arith.mulf %547, %546 : vector<8x64xf32>
    %549 = math.tanh %548 : vector<8x64xf32>
    %cst_230 = arith.constant 5.000000e-01 : f32
    %550 = vector.broadcast %cst_230 : f32 to vector<8x64xf32>
    %551 = arith.mulf %550, %549 : vector<8x64xf32>
    %cst_231 = arith.constant 5.000000e-01 : f32
    %552 = vector.broadcast %cst_231 : f32 to vector<8x64xf32>
    %553 = arith.addf %551, %552 : vector<8x64xf32>
    %554 = vector.extract_strided_slice %529 {offsets = [0, 192], sizes = [8, 64], strides = [1, 1]} : vector<8x256xf32> to vector<8x64xf32>
    %555 = math.tanh %554 : vector<8x64xf32>
    %556 = arith.mulf %537, %484 : vector<8x64xf32>
    %557 = arith.mulf %545, %555 : vector<8x64xf32>
    %558 = arith.addf %556, %557 : vector<8x64xf32>
    %559 = math.tanh %558 : vector<8x64xf32>
    %560 = arith.mulf %553, %559 : vector<8x64xf32>
    %c0_232 = arith.constant 0 : index
    %c0_233 = arith.constant 0 : index
    %561 = vector.load %arg4[%c0_232, %c0_233] : memref<64x256xf32, #tpu.memory_space<vmem>>, vector<64x256xf32>
    %cst_234 = arith.constant dense<0.000000e+00> : vector<8x256xf32>
    %562 = tpu.matmul %560, %561, %cst_234 {dimension_numbers = #tpu.dot_dimension_numbers<[1], [0], [0], [1], [0, 0, 1, 1], [], []>} : vector<8x64xf32>, vector<64x256xf32>, vector<8x256xf32> -> vector<8x256xf32>
    %c0_235 = arith.constant 0 : index
    %c0_236 = arith.constant 0 : index
    %563 = vector.load %arg5[%c0_235, %c0_236] : memref<64x256xf32, #tpu.memory_space<vmem>>, vector<64x256xf32>
    %cst_237 = arith.constant dense<0.000000e+00> : vector<8x256xf32>
    %564 = tpu.matmul %525, %563, %cst_237 {dimension_numbers = #tpu.dot_dimension_numbers<[1], [0], [0], [1], [0, 0, 1, 1], [], []>} : vector<8x64xf32>, vector<64x256xf32>, vector<8x256xf32> -> vector<8x256xf32>
    %565 = arith.addf %562, %564 : vector<8x256xf32>
    %c0_238 = arith.constant 0 : index
    %c0_239 = arith.constant 0 : index
    %566 = vector.load %arg6[%c0_238, %c0_239] : memref<1x256xf32, #tpu.memory_space<vmem>>, vector<1x256xf32>
    %567 = vector.broadcast %566 : vector<1x256xf32> to vector<8x256xf32>
    %568 = arith.addf %565, %567 : vector<8x256xf32>
    %569 = vector.extract_strided_slice %568 {offsets = [0, 0], sizes = [8, 64], strides = [1, 1]} : vector<8x256xf32> to vector<8x64xf32>
    %cst_240 = arith.constant 5.000000e-01 : f32
    %570 = vector.broadcast %cst_240 : f32 to vector<8x64xf32>
    %571 = arith.mulf %570, %569 : vector<8x64xf32>
    %572 = math.tanh %571 : vector<8x64xf32>
    %cst_241 = arith.constant 5.000000e-01 : f32
    %573 = vector.broadcast %cst_241 : f32 to vector<8x64xf32>
    %574 = arith.mulf %573, %572 : vector<8x64xf32>
    %cst_242 = arith.constant 5.000000e-01 : f32
    %575 = vector.broadcast %cst_242 : f32 to vector<8x64xf32>
    %576 = arith.addf %574, %575 : vector<8x64xf32>
    %577 = vector.extract_strided_slice %568 {offsets = [0, 64], sizes = [8, 64], strides = [1, 1]} : vector<8x256xf32> to vector<8x64xf32>
    %cst_243 = arith.constant 5.000000e-01 : f32
    %578 = vector.broadcast %cst_243 : f32 to vector<8x64xf32>
    %579 = arith.mulf %578, %577 : vector<8x64xf32>
    %580 = math.tanh %579 : vector<8x64xf32>
    %cst_244 = arith.constant 5.000000e-01 : f32
    %581 = vector.broadcast %cst_244 : f32 to vector<8x64xf32>
    %582 = arith.mulf %581, %580 : vector<8x64xf32>
    %cst_245 = arith.constant 5.000000e-01 : f32
    %583 = vector.broadcast %cst_245 : f32 to vector<8x64xf32>
    %584 = arith.addf %582, %583 : vector<8x64xf32>
    %585 = vector.extract_strided_slice %568 {offsets = [0, 128], sizes = [8, 64], strides = [1, 1]} : vector<8x256xf32> to vector<8x64xf32>
    %cst_246 = arith.constant 5.000000e-01 : f32
    %586 = vector.broadcast %cst_246 : f32 to vector<8x64xf32>
    %587 = arith.mulf %586, %585 : vector<8x64xf32>
    %588 = math.tanh %587 : vector<8x64xf32>
    %cst_247 = arith.constant 5.000000e-01 : f32
    %589 = vector.broadcast %cst_247 : f32 to vector<8x64xf32>
    %590 = arith.mulf %589, %588 : vector<8x64xf32>
    %cst_248 = arith.constant 5.000000e-01 : f32
    %591 = vector.broadcast %cst_248 : f32 to vector<8x64xf32>
    %592 = arith.addf %590, %591 : vector<8x64xf32>
    %593 = vector.extract_strided_slice %568 {offsets = [0, 192], sizes = [8, 64], strides = [1, 1]} : vector<8x256xf32> to vector<8x64xf32>
    %594 = math.tanh %593 : vector<8x64xf32>
    %595 = arith.mulf %576, %523 : vector<8x64xf32>
    %596 = arith.mulf %584, %594 : vector<8x64xf32>
    %597 = arith.addf %595, %596 : vector<8x64xf32>
    %598 = math.tanh %597 : vector<8x64xf32>
    %599 = arith.mulf %592, %598 : vector<8x64xf32>
    %c0_249 = arith.constant 0 : index
    %c0_250 = arith.constant 0 : index
    %600 = vector.load %arg7[%c0_249, %c0_250] : memref<64x128xf32, #tpu.memory_space<vmem>>, vector<64x128xf32>
    %cst_251 = arith.constant dense<0.000000e+00> : vector<8x128xf32>
    %601 = tpu.matmul %599, %600, %cst_251 {dimension_numbers = #tpu.dot_dimension_numbers<[1], [0], [0], [1], [0, 0, 1, 1], [], []>} : vector<8x64xf32>, vector<64x128xf32>, vector<8x128xf32> -> vector<8x128xf32>
    %c0_252 = arith.constant 0 : index
    %c0_253 = arith.constant 0 : index
    %602 = vector.load %arg8[%c0_252, %c0_253] : memref<1x128xf32, #tpu.memory_space<vmem>>, vector<1x128xf32>
    %603 = vector.broadcast %602 : vector<1x128xf32> to vector<8x128xf32>
    %604 = arith.addf %601, %603 : vector<8x128xf32>
    %cst_254 = arith.constant 0.000000e+00 : f32
    %605 = vector.broadcast %cst_254 : f32 to vector<8x128xf32>
    %606 = arith.maximumf %604, %605 : vector<8x128xf32>
    %c0_255 = arith.constant 0 : index
    %c0_256 = arith.constant 0 : index
    %607 = vector.load %arg9[%c0_255, %c0_256] : memref<128x128xf32, #tpu.memory_space<vmem>>, vector<128x128xf32>
    %cst_257 = arith.constant dense<0.000000e+00> : vector<8x128xf32>
    %608 = tpu.matmul %606, %607, %cst_257 {dimension_numbers = #tpu.dot_dimension_numbers<[1], [0], [0], [1], [0, 0, 1, 1], [], []>} : vector<8x128xf32>, vector<128x128xf32>, vector<8x128xf32> -> vector<8x128xf32>
    %c0_258 = arith.constant 0 : index
    %c0_259 = arith.constant 0 : index
    %609 = vector.load %arg10[%c0_258, %c0_259] : memref<1x128xf32, #tpu.memory_space<vmem>>, vector<1x128xf32>
    %610 = vector.broadcast %609 : vector<1x128xf32> to vector<8x128xf32>
    %611 = arith.addf %608, %610 : vector<8x128xf32>
    %cst_260 = arith.constant 5.000000e-01 : f32
    %612 = vector.broadcast %cst_260 : f32 to vector<8x128xf32>
    %613 = arith.mulf %612, %611 : vector<8x128xf32>
    %614 = math.tanh %613 : vector<8x128xf32>
    %cst_261 = arith.constant 5.000000e-01 : f32
    %615 = vector.broadcast %cst_261 : f32 to vector<8x128xf32>
    %616 = arith.mulf %615, %614 : vector<8x128xf32>
    %cst_262 = arith.constant 5.000000e-01 : f32
    %617 = vector.broadcast %cst_262 : f32 to vector<8x128xf32>
    %618 = arith.addf %616, %617 : vector<8x128xf32>
    %c0_263 = arith.constant 0 : index
    %c0_264 = arith.constant 0 : index
    %619 = vector.load %arg11[%c0_263, %c0_264] : memref<8x128xf32, #tpu.memory_space<vmem>>, vector<8x128xf32>
    tpu.vector_store %arg11[%c0_263, %c0_264], %618 {strides = array<i32>} : memref<8x128xf32, #tpu.memory_space<vmem>>, vector<8x128xf32>,
    return
  }
}

</mosaic_0001>

<bundles_post_ra>
// kernel: tpu_custom_call.1
= control target key start
LH: loop header
LB: loop body
LE: loop exit
PB: predicated region body
PF: predicated region fallthrough
CT: control target
= control target key end

     0   :  { %16 = vsyncpa [#allocation4], 0  ;;  %s4130_s0 = inlined_call_operand.vmem [shape: f32[64,4], index: 0, kind: input, shape index: {}]   ;;  %s4131_s1 = inlined_call_operand.vmem [shape: f32[4,256], index: 1, kind: input, shape index: {}]   ;;  %s4132_s2 = inlined_call_operand.hbm [shape: f32[64,256], index: 2, kind: input, shape index: {}]   ;;  %s4133_s3 = inlined_call_operand.vmem [shape: f32[1,256], index: 3, kind: input, shape index: {}]   ;;  %s4134_s4 = inlined_call_operand.hbm [shape: f32[64,256], index: 4, kind: input, shape index: {}]   ;;  %s4135_s5 = inlined_call_operand.hbm [shape: f32[64,256], index: 5, kind: input, shape index: {}]   ;;  %s4136_s6 = inlined_call_operand.vmem [shape: f32[1,256], index: 6, kind: input, shape index: {}]   ;;  %s4137_s7 = inlined_call_operand.vmem [shape: f32[64,128], index: 7, kind: input, shape index: {}]   ;;  %s4138_s8 = inlined_call_operand.vmem [shape: f32[1,128], index: 8, kind: input, shape index: {}]   ;;  %s4139_s9 = inlined_call_operand.hbm [shape: f32[128,128], index: 9, kind: input, shape index: {}]   ;;  %s4140_s10 = inlined_call_operand.vmem [shape: f32[1,128], index: 10, kind: input, shape index: {}]   ;;  %s4141_s11 = inlined_call_operand.hbm [shape: f32[8,128], index: 11, kind: output, shape index: {}]  }
   0x1   :  { %17 = vsyncpa [#allocation7], 0 }
   0x2   :  { %18 = vsyncpa [#allocation10], 0 }
   0x3   :  { %19 = vsyncpa [#allocation5], 0  ;;  %s3474_s17 = smov [#allocation6]   ;;  %s3475_s19 = smov [#allocation3]  }
   0x4   :  { %s43_s18 = sshll.u32 %s3474_s17, 4  ;;  %s29_s20 = sshll.u32 %s3475_s19, 4  ;;  %s44_s18 = int_to_ptr.vmem [resolvable:$true] %s43_s18  ;;  %s3547_s20 = int_to_ptr.vmem [resolvable:$true] %s29_s20 }
   0x5   :  { %s3356_s23 = scalar_lea.hbm %s4134_s4, 2048 }
   0x6   :  { %p3357_p0 = scmp.ne.s32.totalorder %s4134_s4, %s3356_s23  ;;  %p3360_p1 = scmp.lt.u32.totalorder %s3356_s23, %s4134_s4 }
   0x8   :  { %p3362_p2 = pnand %p3360_p1, %p3357_p0 }
   0xa   :  { %3365 = shalt.err (!%p3362_p2)
}
   0xb   :  { %s3366_s28 = scalar_lea.vmem %s44_s18, 2048  ;;  %p3371_p4 = scmp.lt.s32.totalorder %s44_s18, %s44_s18 }
   0xc   :  { %p3367_p3 = scmp.ne.s32.totalorder %s44_s18, %s3366_s28  ;;  %p3372_p5 = scmp.lt.s32.totalorder %s3366_s28, %s3366_s28 }
   0xe   :  { %p3373_p6 = por %p3372_p5, %p3371_p4 }
  0x10   :  { %p3374_p7 = pnand %p3373_p6, %p3367_p3 }
  0x12   :  { %3377 = shalt.err (!%p3374_p7)
}
  0x13   :  { %s3476_s29 = smov 256   ;;  %s3477_s30 = smov 16  }
  0x14   :  { %49 = dma.hbm_to_vmem [thread:$0]  %s4134_s4, 2048, %s44_s18, [#allocation7], %s3476_s29, %s3476_s29, %s3477_s30  }
  0x15   :  { %s3378_s16 = scalar_lea.hbm %s4132_s2, 2048 }
  0x16   :  { %p3379_p8 = scmp.ne.s32.totalorder %s4132_s2, %s3378_s16  ;;  %p3382_p9 = scmp.lt.u32.totalorder %s3378_s16, %s4132_s2 }
  0x18   :  { %p3384_p10 = pnand %p3382_p9, %p3379_p8 }
  0x1a   :  { %3387 = shalt.err (!%p3384_p10)
}
  0x1b   :  { %s3388_s23 = scalar_lea.vmem %s3547_s20, 2048  ;;  %p3393_p12 = scmp.lt.s32.totalorder %s3547_s20, %s3547_s20 }
  0x1c   :  { %p3389_p11 = scmp.ne.s32.totalorder %s3547_s20, %s3388_s23  ;;  %p3394_p13 = scmp.lt.s32.totalorder %s3388_s23, %s3388_s23 }
  0x1e   :  { %p3395_p0 = por %p3394_p13, %p3393_p12 }
  0x20   :  { %p3396_p1 = pnand %p3395_p0, %p3389_p11 }
  0x22   :  { %3399 = shalt.err (!%p3396_p1)
}
  0x23   :  { %35 = dma.hbm_to_vmem [thread:$0]  %s4132_s2, 2048, %s3547_s20, [#allocation4], %s3476_s29, %s3476_s29, %s3477_s30  }
  0x24   :  { %s3478_s24 = smov [#allocation8]   ;;  %s3479_s26 = smov [#allocation9]  }
  0x25   :  { %s55_s25 = sshll.u32 %s3478_s24, 4  ;;  %s73_s27 = sshll.u32 %s3479_s26, 4  ;;  %s56_s25 = int_to_ptr.vmem [resolvable:$true] %s55_s25  ;;  %s3584_s27 = int_to_ptr.vmem [resolvable:$true] %s73_s27 }
  0x26   :  { %s3400_s13 = scalar_lea.hbm %s4135_s5, 2048 }
  0x27   :  { %p3401_p2 = scmp.ne.s32.totalorder %s4135_s5, %s3400_s13  ;;  %p3404_p3 = scmp.lt.u32.totalorder %s3400_s13, %s4135_s5 }
  0x29   :  { %p3406_p4 = pnand %p3404_p3, %p3401_p2 }
  0x2b   :  { %3409 = shalt.err (!%p3406_p4)
}
  0x2c   :  { %s3410_s2 = scalar_lea.vmem %s56_s25, 2048  ;;  %p3415_p6 = scmp.lt.s32.totalorder %s56_s25, %s56_s25 }
  0x2d   :  { %p3411_p5 = scmp.ne.s32.totalorder %s56_s25, %s3410_s2  ;;  %p3416_p7 = scmp.lt.s32.totalorder %s3410_s2, %s3410_s2 }
  0x2f   :  { %p3417_p8 = por %p3416_p7, %p3415_p6 }
  0x31   :  { %p3418_p9 = pnand %p3417_p8, %p3411_p5 }
  0x33   :  { %3421 = shalt.err (!%p3418_p9)
}
  0x34   :  { %61 = dma.hbm_to_vmem [thread:$0]  %s4135_s5, 2048, %s56_s25, [#allocation7], %s3476_s29, %s3476_s29, %s3477_s30  }
  0x35   :  { %s3422_s23 = scalar_lea.hbm %s4139_s9, 2048 }
  0x36   :  { %p3423_p10 = scmp.ne.s32.totalorder %s4139_s9, %s3422_s23  ;;  %p3426_p11 = scmp.lt.u32.totalorder %s3422_s23, %s4139_s9 }
  0x38   :  { %p3428_p12 = pnand %p3426_p11, %p3423_p10 }
  0x3a   :  { %3431 = shalt.err (!%p3428_p12)
}
  0x3b   :  { %s3432_s28 = scalar_lea.vmem %s3584_s27, 2048  ;;  %p3437_p0 = scmp.lt.s32.totalorder %s3584_s27, %s3584_s27 }
  0x3c   :  { %p3433_p13 = scmp.ne.s32.totalorder %s3584_s27, %s3432_s28  ;;  %p3438_p1 = scmp.lt.s32.totalorder %s3432_s28, %s3432_s28 }
  0x3e   :  { %p3439_p2 = por %p3438_p1, %p3437_p0 }
  0x40   :  { %p3440_p3 = pnand %p3439_p2, %p3433_p13 }
  0x42   :  { %3443 = shalt.err (!%p3440_p3)
}
  0x43   :  { %s3480_s5 = smov 128   ;;  %s3481_s29 = smov 8  }
  0x44   :  { %79 = dma.hbm_to_vmem [thread:$0]  %s4139_s9, 2048, %s3584_s27, [#allocation10], %s3480_s5, %s3480_s5, %s3481_s29  }
  0x45   :  { %3466 = dma.done.wait [#allocation4], 2048  }
  0x46   :  { %3467 = vsyncadd [#allocation4], 4294965248 }
  0x47   :  { %3468 = dma.done.wait [#allocation7], 4096  }
  0x48   :  { %3469 = vsyncadd [#allocation7], 4294963200 }
  0x49   :  { %3470 = dma.done.wait [#allocation10], 2048  }
  0x4a   :  { %3471 = vsyncadd [#allocation10], 4294965248  ;;  %v3482_v0 = vmov 0.0   ;;  %v102_v1 = vld [vmem:[%s4131_s1] sm:$0xff]  ;;  %vm142_vm0 = vcmask 1043456   ;;  %v279_v2 = vld [vmem:[#allocation3 + $0x8] sm:$0xff]  ;;  %v105_v62 = vlaneseq }
  0x4b   :  { %211 = vmatprep.mubr.f32.mxu0 %v3482_v0  ;;  %559 = vmatprep.mubr.f32.mxu1 %v3482_v0  ;;  %v116_v3 = vcombine.high %v102_v1, %v102_v1  ;;  %v281_v4 = vld [vmem:[#allocation3 + $0x18] sm:$0xff]  ;;  %v278_v5 = vld [vmem:[#allocation3] sm:$0xff]  ;;  %v280_v6 = vld [vmem:[#allocation3 + $0x10] sm:$0xff]  ;;  %vm117_vm1 = vcmask 31744   ;;  %vm294_vm2 = vcmask 523264   ;;  %vm3485_vm3 = vmmov 0  }
  0x4c   :  { %v94_v7 = vld [vmem:[%s4130_s0] sm:$0xff]  ;;  %v3626_v8 = vpack.c.bf16 %v281_v4, %v279_v2  ;;  %v3628_v9 = vpack.c.bf16 %v280_v6, %v278_v5  ;;  %v283_v10 = vld [vmem:[#allocation3 + $0x28] sm:$0xff]  ;;  %v282_v12 = vld [vmem:[#allocation3 + $0x20] sm:$0xff]  ;;  %v3727_v63 = vshrl.u32 %v105_v62, 7  ;;  %s3486_s4 = smov [#allocation11]  }
  0x4d   :  { %2629 = vmatprep.subr.msk.mxu0 %vm142_vm0, %v116_v3  ;;  %v285_v11 = vld [vmem:[#allocation3 + $0x38] sm:$0xff]  ;;  %v284_v13 = vld [vmem:[#allocation3 + $0x30] sm:$0xff]  ;;  %v287_v15 = vld [vmem:[#allocation3 + $0x48] sm:$0xff]  ;;  %s2618_s18 = sshll.u32 %s3486_s4, 4  ;;  %s2619_s18 = int_to_ptr.vmem [resolvable:$true] %s2618_s18 }
  0x4e   :  { %2630 = vmatpush1.msk.msra.mxu0 %vm142_vm0, %v102_v1  ;;  %v3630_v14 = vpack.c.bf16 %v285_v11, %v283_v10  ;;  %v289_v16 = vld [vmem:[#allocation3 + $0x58] sm:$0xff]  ;;  %v95_v17 = vld [vmem:[%s4130_s0 + $0x8] sm:$0xff]  ;;  %v3639_v18 = vpack.c.bf16 %v284_v13, %v282_v12  ;;  %v288_v21 = vld [vmem:[#allocation3 + $0x50] sm:$0xff]  ;;  %v107_v1 = vsub.s32 0, %v3727_v63  ;;  %v111_v4 = vsub.s32 1, %v3727_v63  ;;  %p3449_p5 = scmp.lt.s32.totalorder %s2619_s18, %s2619_s18 }
  0x4f   :  { %2631 = vmatmul.mubr.msk.f32.vlgmr.msra.gmra.mrb[0].mxu0 %vm117_vm1, %v94_v7  ;;  %2745 = vmatprep.subr.bf16.mxu0 %v3626_v8  ;;  %v3642_v19 = vpack.c.bf16 %v289_v16, %v287_v15  ;;  %v286_v20 = vld [vmem:[#allocation3 + $0x40] sm:$0xff]  ;;  %v291_v22 = vld [vmem:[#allocation3 + $0x68] sm:$0xff]  ;;  %v293_v23 = vld [vmem:[#allocation3 + $0x78] sm:$0xff] }
  0x50   :  { %2747 = vmatpush1.bf16.msra.mxu0 %v3628_v9  ;;  %217 = vmatprep.mubr.f32.mxu0 %v3482_v0  ;;  %v96_v24 = vld [vmem:[%s4130_s0 + $0x10] sm:$0xff]  ;;  %v3650_v25 = vpack.c.bf16 %v288_v21, %v286_v20  ;;  %v3653_v26 = vpack.c.bf16 %v293_v23, %v291_v22  ;;  %v290_v27 = vld [vmem:[#allocation3 + $0x60] sm:$0xff]  ;;  %v292_v28 = vld [vmem:[#allocation3 + $0x70] sm:$0xff] }
  0x51   :  { %2749 = vmatprep.subr.bf16.mxu0 %v3630_v14  ;;  %v97_v29 = vld [vmem:[%s4130_s0 + $0x18] sm:$0xff]  ;;  %v3661_v30 = vpack.c.bf16 %v292_v28, %v290_v27  ;;  %v98_v31 = vld [vmem:[%s4130_s0 + $0x20] sm:$0xff]  ;;  %v99_v32 = vld [vmem:[%s4130_s0 + $0x28] sm:$0xff] }
  0x52   :  { %v100_v33 = vld [vmem:[%s4130_s0 + $0x30] sm:$0xff]  ;;  %v101_v34 = vld [vmem:[%s4130_s0 + $0x38] sm:$0xff]  ;;  %v408_v36 = vld [vmem:[#allocation8 + $0x18] sm:$0xff] }
  0x53   :  { %2632 = vmatmul.mubr.msk.f32.gmra.mrb[2].mxu0 %vm117_vm1, %v95_v17  ;;  %v406_v35 = vld [vmem:[#allocation8 + $0x8] sm:$0xff]  ;;  %v405_v37 = vld [vmem:[#allocation8] sm:$0xff]  ;;  %v407_v39 = vld [vmem:[#allocation8 + $0x10] sm:$0xff] }
  0x54   :  { %223 = vmatprep.mubr.f32.mxu0 %v3482_v0  ;;  %2751 = vmatpush1.bf16.msra.mxu0 %v3639_v18  ;;  %v3689_v38 = vpack.c.bf16 %v408_v36, %v406_v35  ;;  %v410_v40 = vld [vmem:[#allocation8 + $0x28] sm:$0xff]  ;;  %v412_v41 = vld [vmem:[#allocation8 + $0x38] sm:$0xff]  ;;  %v3691_v42 = vpack.c.bf16 %v407_v39, %v405_v37  ;;  %v409_v44 = vld [vmem:[#allocation8 + $0x20] sm:$0xff] }
  0x55   :  { %2753 = vmatprep.subr.bf16.mxu0 %v3642_v19  ;;  %v3693_v43 = vpack.c.bf16 %v412_v41, %v410_v40  ;;  %v411_v45 = vld [vmem:[#allocation8 + $0x30] sm:$0xff]  ;;  %v414_v46 = vld [vmem:[#allocation8 + $0x48] sm:$0xff]  ;;  %v416_v47 = vld [vmem:[#allocation8 + $0x58] sm:$0xff] }
  0x56   :  { %v3697_v48 = vpack.c.bf16 %v411_v45, %v409_v44  ;;  %v413_v49 = vld [vmem:[#allocation8 + $0x40] sm:$0xff]  ;;  %v3700_v50 = vpack.c.bf16 %v416_v47, %v414_v46  ;;  %v415_v51 = vld [vmem:[#allocation8 + $0x50] sm:$0xff]  ;;  %v390_v52 = vld [vmem:[#allocation6 + $0x8] sm:$0xff] }
  0x57   :  { %2633 = vmatmul.mubr.msk.f32.gmra.mrb[4].mxu0 %vm117_vm1, %v96_v24  ;;  %v392_v53 = vld [vmem:[#allocation6 + $0x18] sm:$0xff]  ;;  %v418_v54 = vld [vmem:[#allocation8 + $0x68] sm:$0xff]  ;;  %v3705_v57 = vpack.c.bf16 %v415_v51, %v413_v49  ;;  %v417_v59 = vld [vmem:[#allocation8 + $0x60] sm:$0xff] }
  0x58   :  { %229 = vmatprep.mubr.f32.mxu0 %v3482_v0  ;;  %2755 = vmatpush1.bf16.msra.mxu0 %v3650_v25  ;;  %v420_v55 = vld [vmem:[#allocation8 + $0x78] sm:$0xff]  ;;  %v3702_v56 = vpack.c.bf16 %v392_v53, %v390_v52  ;;  %v419_v60 = vld [vmem:[#allocation8 + $0x70] sm:$0xff]  ;;  %v389_v13 = vld [vmem:[#allocation6] sm:$0xff] }
  0x59   :  { %2757 = vmatprep.subr.bf16.mxu0 %v3653_v26  ;;  %v3709_v58 = vpack.c.bf16 %v420_v55, %v418_v54  ;;  %v3712_v61 = vpack.c.bf16 %v419_v60, %v417_v59  ;;  %v103_v2 = vld [vmem:[%s4133_s3] sm:$0x3]  ;;  %v391_v15 = vld [vmem:[#allocation6 + $0x10] sm:$0xff]  ;;  %v394_v17 = vld [vmem:[#allocation6 + $0x28] sm:$0xff]  ;;  %s3483_s3 = smov 64  }
  0x5a   :  { %2777 = vmatprep.subr.bf16.mxu1 %v3702_v56  ;;  %v3735_v3 = vrot.slane %v103_v2, %v107_v1  ;;  %v3741_v7 = vrot.slane %v103_v2, %v111_v4  ;;  %v3744_v16 = vpack.c.bf16 %v391_v15, %v389_v13  ;;  %v396_v20 = vld [vmem:[#allocation6 + $0x38] sm:$0xff]  ;;  %v393_v22 = vld [vmem:[#allocation6 + $0x20] sm:$0xff]  ;;  %v395_v23 = vld [vmem:[#allocation6 + $0x30] sm:$0xff] }
  0x5b   :  { %2634 = vmatmul.mubr.msk.f32.gmra.mrb[6].mxu0 %vm117_vm1, %v97_v29  ;;  %v3747_v21 = vpack.c.bf16 %v396_v20, %v394_v17  ;;  %v3749_v24 = vpack.c.bf16 %v395_v23, %v393_v22  ;;  %v398_v27 = vld [vmem:[#allocation6 + $0x48] sm:$0xff]  ;;  %v400_v28 = vld [vmem:[#allocation6 + $0x58] sm:$0xff]  ;;  %v397_v29 = vld [vmem:[#allocation6 + $0x40] sm:$0xff] }
  0x5c   :  { %235 = vmatprep.mubr.f32.mxu0 %v3482_v0  ;;  %2759 = vmatpush1.bf16.msra.mxu0 %v3661_v30  ;;  %v401_v37 = vld [vmem:[#allocation6 + $0x60] sm:$0xff]  ;;  %v403_v39 = vld [vmem:[#allocation6 + $0x70] sm:$0xff] }
  0x5d   :  { %2761 = vmatprep.subr.bf16.mxu0 %v3689_v38  ;;  %2779 = vmatpush1.bf16.msra.mxu1 %v3744_v16  ;;  %v3761_v44 = vpack.c.bf16 %v403_v39, %v401_v37 }
  0x5e   :  { %2781 = vmatprep.subr.bf16.mxu1 %v3747_v21 }
  0x5f   :  { %2635 = vmatmul.mubr.msk.f32.gmra.mrb[8].mxu0 %vm117_vm1, %v98_v31  ;;  %v3752_v31 = vpack.c.bf16 %v400_v28, %v398_v27 }
  0x60   :  { %241 = vmatprep.mubr.f32.mxu0 %v3482_v0 }
  0x61   :  { %2783 = vmatpush1.bf16.msra.mxu1 %v3749_v24 }
  0x62   :  { %2785 = vmatprep.subr.bf16.mxu1 %v3752_v31 }
  0x63   :  { %2636 = vmatmul.mubr.msk.f32.gmra.mrb[10].mxu0 %vm117_vm1, %v99_v32  ;;  %v399_v32 = vld [vmem:[#allocation6 + $0x50] sm:$0xff] }
  0x64   :  { %247 = vmatprep.mubr.f32.mxu0 %v3482_v0  ;;  %v3755_v35 = vpack.c.bf16 %v399_v32, %v397_v29 }
  0x66   :  { %2787 = vmatpush1.bf16.msra.mxu1 %v3755_v35 }
  0x67   :  { %2637 = vmatmul.mubr.msk.f32.gmra.mrb[12].mxu0 %vm117_vm1, %v100_v33  ;;  %v402_v33 = vld [vmem:[#allocation6 + $0x68] sm:$0xff] }
  0x68   :  { %253 = vmatprep.mubr.f32.mxu0 %v3482_v0 }
  0x6b   :  { %2638 = vmatmul.mubr.msk.f32.gmra.mrb[14].mxu0 %vm117_vm1, %v101_v34  ;;  %v404_v34 = vld [vmem:[#allocation6 + $0x78] sm:$0xff] }
  0x6c   :  { %362 = vmatprep.mubr.f32.mxu0 %v3482_v0  ;;  %v3758_v36 = vpack.c.bf16 %v404_v34, %v402_v33 }
  0x6e   :  { %2789 = vmatprep.subr.bf16.mxu1 %v3758_v36 }
  0x6f   :  { %363 = vmatmul.mubr.f32.vlgmr.msra.gmra.mrb[0].mxu0 %v3482_v0  ;;  %2791 = vmatpush1.bf16.msra.mxu1 %v3761_v44 }
  0x70   :  { %485 = vmatprep.mubr.f32.mxu0 %v3482_v0  ;;  %2763 = vmatpush1.bf16.msra.mxu0 %v3691_v42 }
  0x71   :  { %2765 = vmatprep.subr.bf16.mxu0 %v3693_v43  ;;  %2809 = vmatprep.subr.bf16.mxu1 %v3689_v38 }
  0x74   :  { %2767 = vmatpush1.bf16.msra.mxu0 %v3697_v48 }
  0x75   :  { %2769 = vmatprep.subr.bf16.mxu0 %v3700_v50 }
  0x78   :  { %2771 = vmatpush1.bf16.msra.mxu0 %v3705_v57 }
  0x79   :  { %2773 = vmatprep.subr.bf16.mxu0 %v3709_v58 }
  0x7c   :  { %2775 = vmatpush1.bf16.msra.mxu0 %v3712_v61 }
  0x7d   :  { %2793 = vmatprep.subr.bf16.mxu0 %v3626_v8 }
  0x7f   :  { %486 = vmatmul.mubr.f32.vlgmr.msra.gmra.mrb[16].mxu0 %v3482_v0 }
  0x80   :  { %2795 = vmatpush1.bf16.msra.mxu0 %v3628_v9  ;;  %664 = vmatprep.mubr.f32.mxu0 %v3482_v0 }
  0x81   :  { %2797 = vmatprep.subr.bf16.mxu0 %v3630_v14 }
  0x84   :  { %2799 = vmatpush1.bf16.msra.mxu0 %v3639_v18 }
  0x85   :  { %2801 = vmatprep.subr.bf16.mxu0 %v3642_v19 }
  0x88   :  { %2803 = vmatpush1.bf16.msra.mxu0 %v3650_v25 }
  0x89   :  { %2805 = vmatprep.subr.bf16.mxu0 %v3653_v26 }
  0x8c   :  { %2807 = vmatpush1.bf16.msra.mxu0 %v3661_v30 }
  0x8d   :  { %2841 = vmatprep.subr.bf16.mxu0 %v3626_v8 }
 0x142   :  { %v364_v5 = vpop.f32.mrb[0].mxu0 }
 0x143   :  { %v3164_v6 = vadd.f32 %v364_v5, %v3735_v3  ;;  %v366_v10 = vpop.f32.mrb[1].mxu0 }
 0x144   :  { %v3165_v12 = vadd.f32 %v366_v10, %v3741_v7 }
 0x145   :  { %v371_v11 = vmul.f32 0.5, %v3164_v6  ;;  %v566_v6 = vld [vmem:[%s4136_s6] sm:$0x3] }
 0x146   :  { %v375_v52 = vmul.f32 0.5, %v3165_v12  ;;  %v3795_v10 = vrot.slane %v566_v6, %v107_v1  ;;  %v3801_v28 = vrot.slane %v566_v6, %v111_v4 }
 0x147   :  { %3226 = vtanh.f32 %v371_v11 }
 0x148   :  { %3228 = vtanh.f32 %v3165_v12 }
 0x149   :  { %3230 = vtanh.f32 %v375_v52 }
 0x151   :  { %v3227_v40 = vpop.eup %3226 }
 0x152   :  { %v373_v41 = vmul.f32 0.5, %v3227_v40  ;;  %v3229_v46 = vpop.eup %3228  ;;  %v487_v49 = vpop.f32.mrb[16].mxu0 }
 0x153   :  { %v489_v51 = vpop.f32.mrb[17].mxu0  ;;  %v3231_v59 = vpop.eup %3230 }
 0x154   :  { %v374_v45 = vadd.f32 0.5, %v373_v41  ;;  %v377_v60 = vmul.f32 0.5, %v3231_v59 }
 0x156   :  { %v381_v47 = vmul.f32 %v3229_v46, %v374_v45  ;;  %v380_v53 = vmul.f32 0.0, %v374_v45  ;;  %v378_v62 = vadd.f32 0.5, %v377_v60 }
 0x158   :  { %383 = vrot.lane.b32.xlu0 %v381_v47, %s3483_s3 }
 0x1ca   :  { %v384_v54 = vpop.permute.xlu0 %383 }
 0x1cb   :  { %v3767_v55 = vadd.f32 %v384_v54, %v380_v53 }
 0x1cd   :  { %3232 = vtanh.f32 %v3767_v55 }
 0x1d7   :  { %v3233_v2 = vpop.eup %3232 }
 0x1d8   :  { %v388_v5 = vmul.f32 %v3233_v2, %v378_v62 }
 0x1da   :  { %2639 = vmatmul.mubr.msk.f32.vlgmr.msra.gmra.mrb[0].mxu1 %vm294_vm2, %v388_v5  ;;  %2640 = vmatmul.mubr.msk.f32.vlgmr.msra.gmra.mrb[2].mxu0 %vm294_vm2, %v388_v5 }
 0x1db   :  { %2843 = vmatpush1.bf16.msra.mxu0 %v3628_v9  ;;  %2811 = vmatpush1.bf16.msra.mxu1 %v3691_v42 }
 0x1dc   :  { %2845 = vmatprep.subr.bf16.mxu0 %v3630_v14  ;;  %2813 = vmatprep.subr.bf16.mxu1 %v3693_v43 }
 0x1dd   :  { %925 = vmatprep.mubr.f32.mxu0 %v3482_v0  ;;  %758 = vmatprep.mubr.f32.mxu1 %v3482_v0 }
 0x1df   :  { %2847 = vmatpush1.bf16.msra.mxu0 %v3639_v18  ;;  %2815 = vmatpush1.bf16.msra.mxu1 %v3697_v48 }
 0x1e0   :  { %2849 = vmatprep.subr.bf16.mxu0 %v3642_v19  ;;  %2817 = vmatprep.subr.bf16.mxu1 %v3700_v50 }
 0x1e3   :  { %2851 = vmatpush1.bf16.msra.mxu0 %v3650_v25  ;;  %2819 = vmatpush1.bf16.msra.mxu1 %v3705_v57 }
 0x1e4   :  { %2853 = vmatprep.subr.bf16.mxu0 %v3653_v26  ;;  %2821 = vmatprep.subr.bf16.mxu1 %v3709_v58 }
 0x1e7   :  { %2855 = vmatpush1.bf16.msra.mxu0 %v3661_v30  ;;  %2823 = vmatpush1.bf16.msra.mxu1 %v3712_v61 }
 0x1e8   :  { %2825 = vmatprep.subr.bf16.mxu1 %v3702_v56  ;;  %2889 = vmatprep.subr.bf16.mxu0 %v3626_v8 }
 0x2ad   :  { %v561_v11 = vpop.f32.mrb[0].mxu1  ;;  %v666_v12 = vpop.f32.mrb[2].mxu0 }
 0x2ae   :  { %v562_v13 = vadd.f32 %v561_v11, %v487_v49  ;;  %v3166_v15 = vadd.f32 %v666_v12, %v3735_v3  ;;  %v563_v17 = vpop.f32.mrb[1].mxu1  ;;  %v668_v20 = vpop.f32.mrb[3].mxu0 }
 0x2af   :  { %v564_v22 = vadd.f32 %v563_v17, %v489_v51  ;;  %v3167_v1 = vadd.f32 %v668_v20, %v3741_v7 }
 0x2b0   :  { %v578_v23 = vadd.f32 %v3795_v10, %v562_v13  ;;  %v673_v27 = vmul.f32 0.5, %v3166_v15 }
 0x2b1   :  { %v579_v32 = vadd.f32 %v3801_v28, %v564_v22  ;;  %v677_v47 = vmul.f32 0.5, %v3167_v1 }
 0x2b2   :  { %v580_v29 = vmul.f32 0.5, %v578_v23  ;;  %3234 = vtanh.f32 %v673_v27 }
 0x2b3   :  { %v584_v49 = vmul.f32 0.5, %v579_v32 }
 0x2b4   :  { %3236 = vtanh.f32 %v580_v29 }
 0x2b5   :  { %3238 = vtanh.f32 %v3167_v1 }
 0x2b6   :  { %3240 = vtanh.f32 %v579_v32 }
 0x2b7   :  { %3242 = vtanh.f32 %v677_v47 }
 0x2b8   :  { %3244 = vtanh.f32 %v584_v49 }
 0x2bc   :  { %v3235_v33 = vpop.eup %3234 }
 0x2bd   :  { %v675_v34 = vmul.f32 0.5, %v3235_v33 }
 0x2be   :  { %v3237_v37 = vpop.eup %3236 }
 0x2bf   :  { %v582_v39 = vmul.f32 0.5, %v3237_v37  ;;  %v676_v40 = vadd.f32 0.5, %v675_v34  ;;  %v3239_v41 = vpop.eup %3238 }
 0x2c0   :  { %v3241_v63 = vpop.eup %3240 }
 0x2c1   :  { %v683_v45 = vmul.f32 %v3239_v41, %v676_v40  ;;  %v583_v46 = vadd.f32 0.5, %v582_v39  ;;  %v682_v51 = vmul.f32 %v676_v40, %v3767_v55  ;;  %v3243_v62 = vpop.eup %3242 }
 0x2c2   :  { %v3245_v2 = vpop.eup %3244  ;;  %v679_v5 = vmul.f32 0.5, %v3243_v62 }
 0x2c3   :  { %685 = vrot.lane.b32.xlu1 %v683_v45, %s3483_s3  ;;  %v590_v4 = vmul.f32 %v3241_v63, %v583_v46  ;;  %v589_v54 = vmul.f32 0.0, %v583_v46  ;;  %v586_v6 = vmul.f32 0.5, %v3245_v2 }
 0x2c4   :  { %v680_v11 = vadd.f32 0.5, %v679_v5 }
 0x2c5   :  { %592 = vrot.lane.b32.xlu0 %v590_v4, %s3483_s3  ;;  %v587_v13 = vadd.f32 0.5, %v586_v6 }
 0x335   :  { %v686_v52 = vpop.permute.xlu1 %685 }
 0x336   :  { %v3808_v53 = vadd.f32 %v686_v52, %v682_v51 }
 0x337   :  { %v593_v59 = vpop.permute.xlu0 %592 }
 0x338   :  { %3246 = vtanh.f32 %v3808_v53  ;;  %v3811_v60 = vadd.f32 %v593_v59, %v589_v54 }
 0x33a   :  { %3248 = vtanh.f32 %v3811_v60 }
 0x342   :  { %v3247_v12 = vpop.eup %3246 }
 0x343   :  { %v690_v15 = vmul.f32 %v3247_v12, %v680_v11 }
 0x344   :  { %v3249_v55 = vpop.eup %3248 }
 0x345   :  { %2643 = vmatmul.mubr.msk.f32.vlgmr.msra.gmra.mrb[4].mxu0 %vm294_vm2, %v690_v15  ;;  %v597_v17 = vmul.f32 %v3249_v55, %v587_v13 }
 0x346   :  { %2891 = vmatpush1.bf16.msra.mxu0 %v3628_v9  ;;  %1186 = vmatprep.mubr.f32.mxu0 %v3482_v0 }
 0x347   :  { %2641 = vmatmul.mubr.msk.f32.vlgmr.msra.gmra.mrb[2].mxu1 %vm294_vm2, %v597_v17  ;;  %2893 = vmatprep.subr.bf16.mxu0 %v3630_v14 }
 0x348   :  { %2827 = vmatpush1.bf16.msra.mxu1 %v3744_v16  ;;  %832 = vmatprep.mubr.f32.mxu1 %v3482_v0 }
 0x349   :  { %2829 = vmatprep.subr.bf16.mxu1 %v3747_v21 }
 0x34a   :  { %2895 = vmatpush1.bf16.msra.mxu0 %v3639_v18 }
 0x34b   :  { %2897 = vmatprep.subr.bf16.mxu0 %v3642_v19 }
 0x34c   :  { %2831 = vmatpush1.bf16.msra.mxu1 %v3749_v24 }
 0x34d   :  { %2833 = vmatprep.subr.bf16.mxu1 %v3752_v31 }
 0x34e   :  { %2899 = vmatpush1.bf16.msra.mxu0 %v3650_v25 }
 0x34f   :  { %2901 = vmatprep.subr.bf16.mxu0 %v3653_v26 }
 0x350   :  { %2835 = vmatpush1.bf16.msra.mxu1 %v3755_v35 }
 0x351   :  { %2837 = vmatprep.subr.bf16.mxu1 %v3758_v36 }
 0x352   :  { %2903 = vmatpush1.bf16.msra.mxu0 %v3661_v30 }
 0x353   :  { %2905 = vmatprep.subr.bf16.mxu0 %v3689_v38 }
 0x354   :  { %2839 = vmatpush1.bf16.msra.mxu1 %v3761_v44 }
 0x355   :  { %2857 = vmatprep.subr.bf16.mxu1 %v3689_v38 }
 0x357   :  { %2642 = vmatmul.mubr.msk.f32.vlgmr.msra.gmra.mrb[2].mxu1 %vm294_vm2, %v690_v15 }
 0x358   :  { %2859 = vmatpush1.bf16.msra.mxu1 %v3691_v42  ;;  %1019 = vmatprep.mubr.f32.mxu1 %v3482_v0 }
 0x359   :  { %2861 = vmatprep.subr.bf16.mxu1 %v3693_v43 }
 0x35c   :  { %2863 = vmatpush1.bf16.msra.mxu1 %v3697_v48 }
 0x35d   :  { %2865 = vmatprep.subr.bf16.mxu1 %v3700_v50 }
 0x360   :  { %2867 = vmatpush1.bf16.msra.mxu1 %v3705_v57 }
 0x361   :  { %2869 = vmatprep.subr.bf16.mxu1 %v3709_v58 }
 0x364   :  { %2871 = vmatpush1.bf16.msra.mxu1 %v3712_v61 }
 0x365   :  { %2873 = vmatprep.subr.bf16.mxu1 %v3702_v56 }
 0x418   :  { %v927_v20 = vpop.f32.mrb[4].mxu0 }
 0x419   :  { %v3168_v22 = vadd.f32 %v927_v20, %v3735_v3  ;;  %v929_v23 = vpop.f32.mrb[5].mxu0 }
 0x41a   :  { %v3169_v29 = vadd.f32 %v929_v23, %v3741_v7 }
 0x41b   :  { %v934_v27 = vmul.f32 0.5, %v3168_v22 }
 0x41c   :  { %v938_v52 = vmul.f32 0.5, %v3169_v29 }
 0x41d   :  { %3250 = vtanh.f32 %v934_v27 }
 0x41e   :  { %3252 = vtanh.f32 %v3169_v29 }
 0x427   :  { %v3251_v1 = vpop.eup %3250 }
 0x428   :  { %v936_v32 = vmul.f32 0.5, %v3251_v1  ;;  %v3253_v37 = vpop.eup %3252 }
 0x42a   :  { %v937_v33 = vadd.f32 0.5, %v936_v32  ;;  %v834_v34 = vpop.f32.mrb[2].mxu1 }
 0x42b   :  { %v839_v39 = vadd.f32 %v834_v34, %v3795_v10  ;;  %v836_v40 = vpop.f32.mrb[3].mxu1 }
 0x42c   :  { %v944_v41 = vmul.f32 %v3253_v37, %v937_v33  ;;  %v840_v46 = vadd.f32 %v836_v40, %v3801_v28  ;;  %v943_v54 = vmul.f32 %v937_v33, %v3808_v53 }
 0x42d   :  { %v841_v45 = vmul.f32 0.5, %v839_v39 }
 0x42e   :  { %946 = vrot.lane.b32.xlu0 %v944_v41, %s3483_s3  ;;  %v845_v6 = vmul.f32 0.5, %v840_v46 }
 0x42f   :  { %3254 = vtanh.f32 %v841_v45 }
 0x430   :  { %3256 = vtanh.f32 %v840_v46 }
 0x431   :  { %3258 = vtanh.f32 %v938_v52 }
 0x439   :  { %v3255_v63 = vpop.eup %3254 }
 0x43a   :  { %v843_v4 = vmul.f32 0.5, %v3255_v63  ;;  %v3257_v49 = vpop.eup %3256 }
 0x43b   :  { %v3259_v2 = vpop.eup %3258 }
 0x43c   :  { %v844_v47 = vadd.f32 0.5, %v843_v4  ;;  %v940_v5 = vmul.f32 0.5, %v3259_v2 }
 0x43e   :  { %v851_v51 = vmul.f32 %v3257_v49, %v844_v47  ;;  %v941_v11 = vadd.f32 0.5, %v940_v5  ;;  %v850_v15 = vmul.f32 %v844_v47, %v3811_v60 }
 0x440   :  { %853 = vrot.lane.b32.xlu1 %v851_v51, %s3483_s3 }
 0x4a0   :  { %v947_v59 = vpop.permute.xlu0 %946 }
 0x4a1   :  { %v3851_v62 = vadd.f32 %v947_v59, %v943_v54 }
 0x4a3   :  { %3260 = vtanh.f32 %v3851_v62 }
 0x4a4   :  { %3262 = vtanh.f32 %v845_v6 }
 0x4ad   :  { %v3261_v12 = vpop.eup %3260 }
 0x4ae   :  { %v951_v13 = vmul.f32 %v3261_v12, %v941_v11  ;;  %v3263_v17 = vpop.eup %3262 }
 0x4af   :  { %v847_v20 = vmul.f32 0.5, %v3263_v17 }
 0x4b0   :  { %2646 = vmatmul.mubr.msk.f32.vlgmr.msra.gmra.mrb[6].mxu0 %vm294_vm2, %v951_v13 }
 0x4b1   :  { %2907 = vmatpush1.bf16.msra.mxu0 %v3691_v42  ;;  %1280 = vmatprep.mubr.f32.mxu0 %v3482_v0  ;;  %v848_v60 = vadd.f32 0.5, %v847_v20 }
 0x4b2   :  { %v854_v53 = vpop.permute.xlu1 %853  ;;  %2909 = vmatprep.subr.bf16.mxu0 %v3693_v43 }
 0x4b3   :  { %v856_v55 = vadd.f32 %v854_v53, %v850_v15 }
 0x4b5   :  { %3264 = vtanh.f32 %v856_v55  ;;  %2911 = vmatpush1.bf16.msra.mxu0 %v3697_v48 }
 0x4b6   :  { %2913 = vmatprep.subr.bf16.mxu0 %v3700_v50 }
 0x4b9   :  { %2915 = vmatpush1.bf16.msra.mxu0 %v3705_v57 }
 0x4ba   :  { %2917 = vmatprep.subr.bf16.mxu0 %v3709_v58 }
 0x4bd   :  { %2919 = vmatpush1.bf16.msra.mxu0 %v3712_v61 }
 0x4be   :  { %2921 = vmatprep.subr.bf16.mxu0 %v3702_v56 }
 0x4bf   :  { %v3265_v22 = vpop.eup %3264 }
 0x4c0   :  { %v858_v23 = vmul.f32 %v3265_v22, %v848_v60 }
 0x4c2   :  { %2644 = vmatmul.mubr.msk.f32.vlgmr.msra.gmra.mrb[4].mxu1 %vm294_vm2, %v858_v23 }
 0x4c3   :  { %2875 = vmatpush1.bf16.msra.mxu1 %v3744_v16  ;;  %1093 = vmatprep.mubr.f32.mxu1 %v3482_v0 }
 0x4c4   :  { %2877 = vmatprep.subr.bf16.mxu1 %v3747_v21 }
 0x4c7   :  { %2879 = vmatpush1.bf16.msra.mxu1 %v3749_v24 }
 0x4c8   :  { %2881 = vmatprep.subr.bf16.mxu1 %v3752_v31 }
 0x4cb   :  { %2883 = vmatpush1.bf16.msra.mxu1 %v3755_v35 }
 0x4cc   :  { %2885 = vmatprep.subr.bf16.mxu1 %v3758_v36 }
 0x4cf   :  { %2887 = vmatpush1.bf16.msra.mxu1 %v3761_v44 }
 0x4d0   :  { %2953 = vmatprep.subr.bf16.mxu1 %v3689_v38 }
 0x4d2   :  { %2645 = vmatmul.mubr.msk.f32.vlgmr.msra.gmra.mrb[4].mxu1 %vm294_vm2, %v951_v13 }
 0x4d3   :  { %2955 = vmatpush1.bf16.msra.mxu1 %v3691_v42  ;;  %1541 = vmatprep.mubr.f32.mxu1 %v3482_v0 }
 0x4d4   :  { %2957 = vmatprep.subr.bf16.mxu1 %v3693_v43 }
 0x4d7   :  { %2959 = vmatpush1.bf16.msra.mxu1 %v3697_v48 }
 0x4d8   :  { %2961 = vmatprep.subr.bf16.mxu1 %v3700_v50 }
 0x4db   :  { %2963 = vmatpush1.bf16.msra.mxu1 %v3705_v57 }
 0x4dc   :  { %2965 = vmatprep.subr.bf16.mxu1 %v3709_v58 }
 0x4df   :  { %2967 = vmatpush1.bf16.msra.mxu1 %v3712_v61 }
 0x4e0   :  { %2969 = vmatprep.subr.bf16.mxu1 %v3702_v56 }
 0x583   :  { %v1188_v27 = vpop.f32.mrb[6].mxu0 }
 0x584   :  { %v3170_v29 = vadd.f32 %v1188_v27, %v3735_v3  ;;  %v1190_v1 = vpop.f32.mrb[7].mxu0 }
 0x585   :  { %v3171_v33 = vadd.f32 %v1190_v1, %v3741_v7 }
 0x586   :  { %v1195_v32 = vmul.f32 0.5, %v3170_v29 }
 0x587   :  { %v1199_v13 = vmul.f32 0.5, %v3171_v33 }
 0x588   :  { %3266 = vtanh.f32 %v1195_v32 }
 0x589   :  { %3268 = vtanh.f32 %v3171_v33 }
 0x592   :  { %v3267_v34 = vpop.eup %3266 }
 0x593   :  { %v1197_v37 = vmul.f32 0.5, %v3267_v34  ;;  %v3269_v40 = vpop.eup %3268 }
 0x595   :  { %v1198_v39 = vadd.f32 0.5, %v1197_v37 }
 0x597   :  { %v1205_v41 = vmul.f32 %v3269_v40, %v1198_v39  ;;  %v1204_v17 = vmul.f32 %v1198_v39, %v3851_v62 }
 0x599   :  { %1207 = vrot.lane.b32.xlu0 %v1205_v41, %s3483_s3 }
 0x5a5   :  { %v1095_v45 = vpop.f32.mrb[4].mxu1 }
 0x5a6   :  { %v1100_v46 = vadd.f32 %v1095_v45, %v3795_v10  ;;  %v1097_v63 = vpop.f32.mrb[5].mxu1 }
 0x5a7   :  { %v1101_v47 = vadd.f32 %v1097_v63, %v3801_v28 }
 0x5a8   :  { %v1102_v4 = vmul.f32 0.5, %v1100_v46 }
 0x5a9   :  { %v1106_v2 = vmul.f32 0.5, %v1101_v47 }
 0x5aa   :  { %3270 = vtanh.f32 %v1102_v4 }
 0x5ab   :  { %3272 = vtanh.f32 %v1101_v47 }
 0x5ac   :  { %3274 = vtanh.f32 %v1106_v2 }
 0x5b4   :  { %v3271_v49 = vpop.eup %3270 }
 0x5b5   :  { %v1104_v51 = vmul.f32 0.5, %v3271_v49  ;;  %v3273_v54 = vpop.eup %3272 }
 0x5b6   :  { %v3275_v12 = vpop.eup %3274 }
 0x5b7   :  { %v1105_v52 = vadd.f32 0.5, %v1104_v51  ;;  %v1108_v15 = vmul.f32 0.5, %v3275_v12 }
 0x5b9   :  { %v1112_v59 = vmul.f32 %v3273_v54, %v1105_v52  ;;  %v1111_v5 = vmul.f32 %v1105_v52, %v856_v55  ;;  %v1109_v20 = vadd.f32 0.5, %v1108_v15 }
 0x5bb   :  { %1114 = vrot.lane.b32.xlu1 %v1112_v59, %s3483_s3 }
 0x60b   :  { %v1208_v53 = vpop.permute.xlu0 %1207 }
 0x60c   :  { %v3895_v22 = vadd.f32 %v1208_v53, %v1204_v17 }
 0x62d   :  { %v1115_v6 = vpop.permute.xlu1 %1114 }
 0x62e   :  { %v3891_v11 = vadd.f32 %v1115_v6, %v1111_v5 }
 0x630   :  { %3276 = vtanh.f32 %v3891_v11 }
 0x631   :  { %3278 = vtanh.f32 %v1199_v13 }
 0x632   :  { %3280 = vtanh.f32 %v3895_v22 }
 0x63a   :  { %v3277_v60 = vpop.eup %3276 }
 0x63b   :  { %v1119_v23 = vmul.f32 %v3277_v60, %v1109_v20  ;;  %v3279_v55 = vpop.eup %3278 }
 0x63c   :  { %v1201_v62 = vmul.f32 0.5, %v3279_v55  ;;  %v3281_v27 = vpop.eup %3280 }
 0x63d   :  { %2647 = vmatmul.mubr.msk.f32.vlgmr.msra.gmra.mrb[18].mxu0 %vm294_vm2, %v1119_v23 }
 0x63e   :  { %2923 = vmatpush1.bf16.msra.mxu0 %v3744_v16  ;;  %1354 = vmatprep.mubr.f32.mxu0 %v3482_v0  ;;  %v1202_v29 = vadd.f32 0.5, %v1201_v62 }
 0x63f   :  { %2925 = vmatprep.subr.bf16.mxu0 %v3747_v21 }
 0x640   :  { %v1212_v1 = vmul.f32 %v3281_v27, %v1202_v29 }
 0x642   :  { %2927 = vmatpush1.bf16.msra.mxu0 %v3749_v24 }
 0x643   :  { %2929 = vmatprep.subr.bf16.mxu0 %v3752_v31 }
 0x646   :  { %2931 = vmatpush1.bf16.msra.mxu0 %v3755_v35 }
 0x647   :  { %2933 = vmatprep.subr.bf16.mxu0 %v3758_v36 }
 0x64a   :  { %2935 = vmatpush1.bf16.msra.mxu0 %v3761_v44 }
 0x64b   :  { %2937 = vmatprep.subr.bf16.mxu0 %v3626_v8 }
 0x64d   :  { %2648 = vmatmul.mubr.msk.f32.vlgmr.msra.gmra.mrb[18].mxu0 %vm294_vm2, %v1212_v1 }
 0x64e   :  { %2939 = vmatpush1.bf16.msra.mxu0 %v3628_v9  ;;  %1447 = vmatprep.mubr.f32.mxu0 %v3482_v0 }
 0x64f   :  { %2941 = vmatprep.subr.bf16.mxu0 %v3630_v14 }
 0x652   :  { %2943 = vmatpush1.bf16.msra.mxu0 %v3639_v18 }
 0x653   :  { %2945 = vmatprep.subr.bf16.mxu0 %v3642_v19 }
 0x656   :  { %2947 = vmatpush1.bf16.msra.mxu0 %v3650_v25 }
 0x657   :  { %2949 = vmatprep.subr.bf16.mxu0 %v3653_v26 }
 0x65a   :  { %2951 = vmatpush1.bf16.msra.mxu0 %v3661_v30 }
 0x65b   :  { %2985 = vmatprep.subr.bf16.mxu0 %v3626_v8 }
 0x65d   :  { %2649 = vmatmul.mubr.msk.f32.vlgmr.msra.gmra.mrb[8].mxu0 %vm294_vm2, %v1212_v1 }
 0x65e   :  { %2987 = vmatpush1.bf16.msra.mxu0 %v3628_v9  ;;  %1708 = vmatprep.mubr.f32.mxu0 %v3482_v0 }
 0x65f   :  { %2989 = vmatprep.subr.bf16.mxu0 %v3630_v14 }
 0x662   :  { %2991 = vmatpush1.bf16.msra.mxu0 %v3639_v18 }
 0x663   :  { %2993 = vmatprep.subr.bf16.mxu0 %v3642_v19 }
 0x666   :  { %2995 = vmatpush1.bf16.msra.mxu0 %v3650_v25 }
 0x667   :  { %2997 = vmatprep.subr.bf16.mxu0 %v3653_v26 }
 0x66a   :  { %2999 = vmatpush1.bf16.msra.mxu0 %v3661_v30 }
 0x66b   :  { %3033 = vmatprep.subr.bf16.mxu0 %v3626_v8 }
 0x720   :  { %v1356_v32 = vpop.f32.mrb[18].mxu0 }
 0x721   :  { %v1361_v33 = vadd.f32 %v1356_v32, %v3795_v10  ;;  %v1358_v34 = vpop.f32.mrb[19].mxu0 }
 0x722   :  { %v1362_v39 = vadd.f32 %v1358_v34, %v3801_v28 }
 0x723   :  { %v1363_v37 = vmul.f32 0.5, %v1361_v33 }
 0x724   :  { %v1367_v12 = vmul.f32 0.5, %v1362_v39 }
 0x725   :  { %3282 = vtanh.f32 %v1363_v37 }
 0x726   :  { %3284 = vtanh.f32 %v1362_v39 }
 0x72f   :  { %v3283_v40 = vpop.eup %3282 }
 0x730   :  { %v1365_v41 = vmul.f32 0.5, %v3283_v40  ;;  %v1449_v45 = vpop.f32.mrb[8].mxu0  ;;  %v3285_v47 = vpop.eup %3284 }
 0x731   :  { %v3172_v46 = vadd.f32 %v1449_v45, %v3735_v3  ;;  %v1451_v63 = vpop.f32.mrb[9].mxu0 }
 0x732   :  { %v1366_v4 = vadd.f32 0.5, %v1365_v41  ;;  %v3173_v52 = vadd.f32 %v1451_v63, %v3741_v7 }
 0x733   :  { %v1456_v49 = vmul.f32 0.5, %v3172_v46 }
 0x734   :  { %v1373_v51 = vmul.f32 %v3285_v47, %v1366_v4  ;;  %v1372_v13 = vmul.f32 %v1366_v4, %v3891_v11  ;;  %v1460_v20 = vmul.f32 0.5, %v3173_v52 }
 0x735   :  { %3286 = vtanh.f32 %v1456_v49 }
 0x736   :  { %1375 = vrot.lane.b32.xlu1 %v1373_v51, %s3483_s3  ;;  %3288 = vtanh.f32 %v3173_v52 }
 0x737   :  { %3290 = vtanh.f32 %v1367_v12 }
 0x73f   :  { %v3287_v54 = vpop.eup %3286 }
 0x740   :  { %v1458_v59 = vmul.f32 0.5, %v3287_v54  ;;  %v3289_v5 = vpop.eup %3288 }
 0x741   :  { %v3291_v17 = vpop.eup %3290 }
 0x742   :  { %v1459_v2 = vadd.f32 0.5, %v1458_v59  ;;  %v1369_v60 = vmul.f32 0.5, %v3291_v17 }
 0x744   :  { %v1466_v6 = vmul.f32 %v3289_v5, %v1459_v2  ;;  %v1370_v23 = vadd.f32 0.5, %v1369_v60  ;;  %v1465_v27 = vmul.f32 %v1459_v2, %v3895_v22 }
 0x746   :  { %1468 = vrot.lane.b32.xlu0 %v1466_v6, %s3483_s3 }
 0x7a8   :  { %v1376_v15 = vpop.permute.xlu1 %1375 }
 0x7a9   :  { %v3935_v53 = vadd.f32 %v1376_v15, %v1372_v13 }
 0x7ab   :  { %3292 = vtanh.f32 %v3935_v53 }
 0x7ac   :  { %3294 = vtanh.f32 %v1460_v20 }
 0x7b5   :  { %v3293_v55 = vpop.eup %3292 }
 0x7b6   :  { %v1380_v62 = vmul.f32 %v3293_v55, %v1370_v23  ;;  %v3295_v11 = vpop.eup %3294 }
 0x7b7   :  { %v1462_v32 = vmul.f32 0.5, %v3295_v11 }
 0x7b8   :  { %v1469_v29 = vpop.permute.xlu0 %1468  ;;  %2650 = vmatmul.mubr.msk.f32.vlgmr.msra.gmra.mrb[6].mxu1 %vm294_vm2, %v1380_v62 }
 0x7b9   :  { %v3940_v1 = vadd.f32 %v1469_v29, %v1465_v27  ;;  %2971 = vmatpush1.bf16.msra.mxu1 %v3744_v16  ;;  %1615 = vmatprep.mubr.f32.mxu1 %v3482_v0  ;;  %v1463_v22 = vadd.f32 0.5, %v1462_v32 }
 0x7ba   :  { %2973 = vmatprep.subr.bf16.mxu1 %v3747_v21 }
 0x7bb   :  { %3296 = vtanh.f32 %v3940_v1 }
 0x7bd   :  { %2975 = vmatpush1.bf16.msra.mxu1 %v3749_v24 }
 0x7be   :  { %2977 = vmatprep.subr.bf16.mxu1 %v3752_v31 }
 0x7c1   :  { %2979 = vmatpush1.bf16.msra.mxu1 %v3755_v35 }
 0x7c2   :  { %2981 = vmatprep.subr.bf16.mxu1 %v3758_v36 }
 0x7c5   :  { %v3297_v33 = vpop.eup %3296  ;;  %2983 = vmatpush1.bf16.msra.mxu1 %v3761_v44 }
 0x7c6   :  { %v1473_v34 = vmul.f32 %v3297_v33, %v1463_v22  ;;  %3001 = vmatprep.subr.bf16.mxu1 %v3689_v38 }
 0x7c8   :  { %2651 = vmatmul.mubr.msk.f32.vlgmr.msra.gmra.mrb[6].mxu1 %vm294_vm2, %v1473_v34  ;;  %2652 = vmatmul.mubr.msk.f32.vlgmr.msra.gmra.mrb[10].mxu0 %vm294_vm2, %v1473_v34 }
 0x7c9   :  { %3003 = vmatpush1.bf16.msra.mxu1 %v3691_v42  ;;  %3035 = vmatpush1.bf16.msra.mxu0 %v3628_v9 }
 0x7ca   :  { %3005 = vmatprep.subr.bf16.mxu1 %v3693_v43  ;;  %3037 = vmatprep.subr.bf16.mxu0 %v3630_v14 }
 0x7cb   :  { %1802 = vmatprep.mubr.f32.mxu1 %v3482_v0  ;;  %1969 = vmatprep.mubr.f32.mxu0 %v3482_v0 }
 0x7cd   :  { %3007 = vmatpush1.bf16.msra.mxu1 %v3697_v48  ;;  %3039 = vmatpush1.bf16.msra.mxu0 %v3639_v18 }
 0x7ce   :  { %3009 = vmatprep.subr.bf16.mxu1 %v3700_v50  ;;  %3041 = vmatprep.subr.bf16.mxu0 %v3642_v19 }
 0x7d1   :  { %3011 = vmatpush1.bf16.msra.mxu1 %v3705_v57  ;;  %3043 = vmatpush1.bf16.msra.mxu0 %v3650_v25 }
 0x7d2   :  { %3013 = vmatprep.subr.bf16.mxu1 %v3709_v58  ;;  %3045 = vmatprep.subr.bf16.mxu0 %v3653_v26 }
 0x7d5   :  { %3015 = vmatpush1.bf16.msra.mxu1 %v3712_v61  ;;  %3047 = vmatpush1.bf16.msra.mxu0 %v3661_v30 }
 0x7d6   :  { %3017 = vmatprep.subr.bf16.mxu1 %v3702_v56  ;;  %3081 = vmatprep.subr.bf16.mxu0 %v3626_v8 }
 0x89b   :  { %v1617_v37 = vpop.f32.mrb[6].mxu1  ;;  %v1710_v39 = vpop.f32.mrb[10].mxu0 }
 0x89c   :  { %v1622_v40 = vadd.f32 %v1617_v37, %v3795_v10  ;;  %v3174_v41 = vadd.f32 %v1710_v39, %v3735_v3  ;;  %v1619_v45 = vpop.f32.mrb[7].mxu1  ;;  %v1712_v46 = vpop.f32.mrb[11].mxu0 }
 0x89d   :  { %v1623_v47 = vadd.f32 %v1619_v45, %v3801_v28  ;;  %v3175_v49 = vadd.f32 %v1712_v46, %v3741_v7 }
 0x89e   :  { %v1624_v63 = vmul.f32 0.5, %v1622_v40  ;;  %v1717_v4 = vmul.f32 0.5, %v3174_v41 }
 0x89f   :  { %v1628_v15 = vmul.f32 0.5, %v1623_v47  ;;  %v1721_v17 = vmul.f32 0.5, %v3175_v49 }
 0x8a0   :  { %3298 = vtanh.f32 %v1624_v63 }
 0x8a1   :  { %3300 = vtanh.f32 %v1717_v4 }
 0x8a2   :  { %3302 = vtanh.f32 %v1623_v47 }
 0x8a3   :  { %3304 = vtanh.f32 %v3175_v49 }
 0x8a4   :  { %3306 = vtanh.f32 %v1628_v15 }
 0x8a5   :  { %3308 = vtanh.f32 %v1721_v17 }
 0x8aa   :  { %v3299_v51 = vpop.eup %3298 }
 0x8ab   :  { %v3301_v8 = vpop.eup %3300  ;;  %v1626_v52 = vmul.f32 0.5, %v3299_v51 }
 0x8ac   :  { %v1719_v54 = vmul.f32 0.5, %v3301_v8  ;;  %v3303_v2 = vpop.eup %3302 }
 0x8ad   :  { %v1627_v59 = vadd.f32 0.5, %v1626_v52  ;;  %v3305_v6 = vpop.eup %3304 }
 0x8ae   :  { %v1720_v5 = vadd.f32 0.5, %v1719_v54  ;;  %v3307_v29 = vpop.eup %3306 }
 0x8af   :  { %v1634_v12 = vmul.f32 %v3303_v2, %v1627_v59  ;;  %v1633_v20 = vmul.f32 %v1627_v59, %v3935_v53  ;;  %v3309_v11 = vpop.eup %3308  ;;  %v1630_v32 = vmul.f32 0.5, %v3307_v29 }
 0x8b0   :  { %v1727_v13 = vmul.f32 %v3305_v6, %v1720_v5  ;;  %v1726_v60 = vmul.f32 %v1720_v5, %v3940_v1  ;;  %v1723_v22 = vmul.f32 0.5, %v3309_v11 }
 0x8b1   :  { %1636 = vrot.lane.b32.xlu1 %v1634_v12, %s3483_s3  ;;  %v1631_v33 = vadd.f32 0.5, %v1630_v32 }
 0x8b2   :  { %1729 = vrot.lane.b32.xlu0 %v1727_v13, %s3483_s3  ;;  %v1724_v37 = vadd.f32 0.5, %v1723_v22 }
 0x923   :  { %v1637_v23 = vpop.permute.xlu1 %1636 }
 0x924   :  { %v1730_v55 = vpop.permute.xlu0 %1729  ;;  %v3980_v62 = vadd.f32 %v1637_v23, %v1633_v20 }
 0x925   :  { %v3982_v27 = vadd.f32 %v1730_v55, %v1726_v60 }
 0x926   :  { %3310 = vtanh.f32 %v3980_v62 }
 0x927   :  { %3312 = vtanh.f32 %v3982_v27 }
 0x930   :  { %v3311_v34 = vpop.eup %3310 }
 0x931   :  { %v3313_v53 = vpop.eup %3312  ;;  %v1641_v39 = vmul.f32 %v3311_v34, %v1631_v33 }
 0x932   :  { %v1734_v1 = vmul.f32 %v3313_v53, %v1724_v37 }
 0x933   :  { %2653 = vmatmul.mubr.msk.f32.vlgmr.msra.gmra.mrb[8].mxu1 %vm294_vm2, %v1641_v39 }
 0x934   :  { %3019 = vmatpush1.bf16.msra.mxu1 %v3744_v16  ;;  %2655 = vmatmul.mubr.msk.f32.vlgmr.msra.gmra.mrb[12].mxu0 %vm294_vm2, %v1734_v1 }
 0x935   :  { %3021 = vmatprep.subr.bf16.mxu1 %v3747_v21  ;;  %1876 = vmatprep.mubr.f32.mxu1 %v3482_v0 }
 0x936   :  { %3083 = vmatpush1.bf16.msra.mxu0 %v3628_v9  ;;  %2230 = vmatprep.mubr.f32.mxu0 %v3482_v0 }
 0x937   :  { %3085 = vmatprep.subr.bf16.mxu0 %v3630_v14 }
 0x938   :  { %3023 = vmatpush1.bf16.msra.mxu1 %v3749_v24 }
 0x939   :  { %3025 = vmatprep.subr.bf16.mxu1 %v3752_v31 }
 0x93a   :  { %3087 = vmatpush1.bf16.msra.mxu0 %v3639_v18 }
 0x93b   :  { %3089 = vmatprep.subr.bf16.mxu0 %v3642_v19 }
 0x93c   :  { %3027 = vmatpush1.bf16.msra.mxu1 %v3755_v35 }
 0x93d   :  { %3029 = vmatprep.subr.bf16.mxu1 %v3758_v36 }
 0x93e   :  { %3091 = vmatpush1.bf16.msra.mxu0 %v3650_v25 }
 0x93f   :  { %3093 = vmatprep.subr.bf16.mxu0 %v3653_v26 }
 0x940   :  { %3031 = vmatpush1.bf16.msra.mxu1 %v3761_v44 }
 0x941   :  { %3049 = vmatprep.subr.bf16.mxu1 %v3689_v38 }
 0x942   :  { %3095 = vmatpush1.bf16.msra.mxu0 %v3661_v30 }
 0x943   :  { %2654 = vmatmul.mubr.msk.f32.vlgmr.msra.gmra.mrb[8].mxu1 %vm294_vm2, %v1734_v1  ;;  %3097 = vmatprep.subr.bf16.mxu0 %v3689_v38 }
 0x944   :  { %3051 = vmatpush1.bf16.msra.mxu1 %v3691_v42  ;;  %2063 = vmatprep.mubr.f32.mxu1 %v3482_v0 }
 0x945   :  { %3053 = vmatprep.subr.bf16.mxu1 %v3693_v43 }
 0x948   :  { %3055 = vmatpush1.bf16.msra.mxu1 %v3697_v48 }
 0x949   :  { %3057 = vmatprep.subr.bf16.mxu1 %v3700_v50 }
 0x94c   :  { %3059 = vmatpush1.bf16.msra.mxu1 %v3705_v57 }
 0x94d   :  { %3061 = vmatprep.subr.bf16.mxu1 %v3709_v58 }
 0x950   :  { %3063 = vmatpush1.bf16.msra.mxu1 %v3712_v61 }
 0x951   :  { %3065 = vmatprep.subr.bf16.mxu1 %v3702_v56 }
 0xa07   :  { %v1971_v9 = vpop.f32.mrb[12].mxu0 }
 0xa08   :  { %v3176_v14 = vadd.f32 %v1971_v9, %v3735_v3  ;;  %v1973_v18 = vpop.f32.mrb[13].mxu0 }
 0xa09   :  { %v3177_v25 = vadd.f32 %v1973_v18, %v3741_v7 }
 0xa0a   :  { %v1978_v19 = vmul.f32 0.5, %v3176_v14 }
 0xa0b   :  { %v1982_v59 = vmul.f32 0.5, %v3177_v25 }
 0xa0c   :  { %3314 = vtanh.f32 %v1978_v19 }
 0xa0d   :  { %3316 = vtanh.f32 %v3177_v25 }
 0xa16   :  { %v3315_v26 = vpop.eup %3314  ;;  %v1878_v30 = vpop.f32.mrb[8].mxu1 }
 0xa17   :  { %v1980_v38 = vmul.f32 0.5, %v3315_v26  ;;  %v1883_v40 = vadd.f32 %v1878_v30, %v3795_v10  ;;  %v1880_v41 = vpop.f32.mrb[9].mxu1  ;;  %v3317_v63 = vpop.eup %3316 }
 0xa18   :  { %v1884_v4 = vadd.f32 %v1880_v41, %v3801_v28 }
 0xa19   :  { %v1981_v45 = vadd.f32 0.5, %v1980_v38  ;;  %v1885_v46 = vmul.f32 0.5, %v1883_v40 }
 0xa1a   :  { %v1889_v13 = vmul.f32 0.5, %v1884_v4 }
 0xa1b   :  { %3318 = vtanh.f32 %v1885_v46  ;;  %v1988_v47 = vmul.f32 %v3317_v63, %v1981_v45  ;;  %v1987_v2 = vmul.f32 %v1981_v45, %v3982_v27 }
 0xa1c   :  { %3320 = vtanh.f32 %v1884_v4 }
 0xa1d   :  { %1990 = vrot.lane.b32.xlu0 %v1988_v47, %s3483_s3  ;;  %3322 = vtanh.f32 %v1982_v59 }
 0xa25   :  { %v3319_v49 = vpop.eup %3318 }
 0xa26   :  { %v1887_v51 = vmul.f32 0.5, %v3319_v49  ;;  %v3321_v52 = vpop.eup %3320 }
 0xa27   :  { %v3323_v12 = vpop.eup %3322 }
 0xa28   :  { %v1888_v8 = vadd.f32 0.5, %v1887_v51  ;;  %v1984_v15 = vmul.f32 0.5, %v3323_v12 }
 0xa2a   :  { %v1895_v54 = vmul.f32 %v3321_v52, %v1888_v8  ;;  %v1985_v17 = vadd.f32 0.5, %v1984_v15  ;;  %v1894_v60 = vmul.f32 %v1888_v8, %v3980_v62  ;;  %v2430_v15 = vld [vmem:[%s4137_s7 + $0x28] sm:$0xff] }
 0xa2c   :  { %1897 = vrot.lane.b32.xlu1 %v1895_v54, %s3483_s3 }
 0xa8f   :  { %v1991_v5 = vpop.permute.xlu0 %1990 }
 0xa90   :  { %v4023_v6 = vadd.f32 %v1991_v5, %v1987_v2  ;;  %v3484_v5 = vmov 0.0|0.0  }
 0xa92   :  { %3324 = vtanh.f32 %v4023_v6 }
 0xa93   :  { %3326 = vtanh.f32 %v1889_v13  ;;  %v2429_v13 = vld [vmem:[%s4137_s7 + $0x20] sm:$0xff] }
 0xa9c   :  { %v3325_v20 = vpop.eup %3324 }
 0xa9d   :  { %v1995_v23 = vmul.f32 %v3325_v20, %v1985_v17  ;;  %v3327_v27 = vpop.eup %3326  ;;  %v3135_v20 = vpack.c.bf16 %v2430_v15, %v2429_v13 }
 0xa9e   :  { %v1898_v55 = vpop.permute.xlu1 %1897  ;;  %v1891_v62 = vmul.f32 0.5, %v3327_v27 }
 0xa9f   :  { %v4027_v29 = vadd.f32 %v1898_v55, %v1894_v60  ;;  %2658 = vmatmul.mubr.msk.f32.vlgmr.msra.gmra.mrb[14].mxu0 %vm294_vm2, %v1995_v23  ;;  %v2432_v55 = vld [vmem:[%s4137_s7 + $0x38] sm:$0xff] }
 0xaa0   :  { %3099 = vmatpush1.bf16.msra.mxu0 %v3691_v42  ;;  %2324 = vmatprep.mubr.f32.mxu0 %v3482_v0  ;;  %v1892_v11 = vadd.f32 0.5, %v1891_v62 }
 0xaa1   :  { %3328 = vtanh.f32 %v4027_v29  ;;  %3101 = vmatprep.subr.bf16.mxu0 %v3693_v43 }
 0xaa4   :  { %3103 = vmatpush1.bf16.msra.mxu0 %v3697_v48 }
 0xaa5   :  { %3105 = vmatprep.subr.bf16.mxu0 %v3700_v50 }
 0xaa8   :  { %3107 = vmatpush1.bf16.msra.mxu0 %v3705_v57 }
 0xaa9   :  { %3109 = vmatprep.subr.bf16.mxu0 %v3709_v58 }
 0xaab   :  { %v3329_v32 = vpop.eup %3328 }
 0xaac   :  { %v1902_v22 = vmul.f32 %v3329_v32, %v1892_v11  ;;  %3111 = vmatpush1.bf16.msra.mxu0 %v3712_v61 }
 0xaad   :  { %3113 = vmatprep.subr.bf16.mxu0 %v3702_v56 }
 0xaae   :  { %2656 = vmatmul.mubr.msk.f32.vlgmr.msra.gmra.mrb[10].mxu1 %vm294_vm2, %v1902_v22 }
 0xaaf   :  { %3067 = vmatpush1.bf16.msra.mxu1 %v3744_v16  ;;  %2137 = vmatprep.mubr.f32.mxu1 %v3482_v0 }
 0xab0   :  { %3069 = vmatprep.subr.bf16.mxu1 %v3747_v21 }
 0xab3   :  { %3071 = vmatpush1.bf16.msra.mxu1 %v3749_v24 }
 0xab4   :  { %3073 = vmatprep.subr.bf16.mxu1 %v3752_v31 }
 0xab7   :  { %3075 = vmatpush1.bf16.msra.mxu1 %v3755_v35 }
 0xab8   :  { %3077 = vmatprep.subr.bf16.mxu1 %v3758_v36 }
 0xabb   :  { %3079 = vmatpush1.bf16.msra.mxu1 %v3761_v44 }
 0xabc   :  { %3128 = vmatprep.subr.bf16.mxu1 %v3484_v5 }
 0xabe   :  { %2657 = vmatmul.mubr.msk.f32.vlgmr.msra.gmra.mrb[10].mxu1 %vm294_vm2, %v1995_v23  ;;  %v2431_v23 = vld [vmem:[%s4137_s7 + $0x30] sm:$0xff] }
 0xabf   :  { %2706 = vmatprep.mubr.msk.f32.mxu1 %vm3485_vm3, %v3482_v0  ;;  %v3138_v62 = vpack.c.bf16 %v2432_v55, %v2431_v23 }
 0xb72   :  { %v2232_v42 = vpop.f32.mrb[14].mxu0 }
 0xb73   :  { %v3178_v43 = vadd.f32 %v2232_v42, %v3735_v3  ;;  %v2234_v48 = vpop.f32.mrb[15].mxu0 }
 0xb74   :  { %v3179_v56 = vadd.f32 %v2234_v48, %v3741_v7 }
 0xb75   :  { %v2239_v50 = vmul.f32 0.5, %v3178_v43 }
 0xb76   :  { %v2243_v25 = vmul.f32 0.5, %v3179_v56 }
 0xb77   :  { %3330 = vtanh.f32 %v2239_v50 }
 0xb78   :  { %3332 = vtanh.f32 %v3179_v56  ;;  %v2514_v56 = vld [vmem:[#allocation9] sm:$0xff] }
 0xb81   :  { %v3331_v57 = vpop.eup %3330 }
 0xb82   :  { %v2241_v58 = vmul.f32 0.5, %v3331_v57  ;;  %v3333_v33 = vpop.eup %3332  ;;  %v2515_v57 = vld [vmem:[#allocation9 + $0x8] sm:$0xff] }
 0xb84   :  { %v2242_v61 = vadd.f32 0.5, %v2241_v58 }
 0xb86   :  { %v2249_v34 = vmul.f32 %v3333_v33, %v2242_v61  ;;  %v2248_v26 = vmul.f32 %v2242_v61, %v4023_v6  ;;  %v3141_v33 = vpack.c.bf16 %v2515_v57, %v2514_v56 }
 0xb88   :  { %2251 = vrot.lane.b32.xlu0 %v2249_v34, %s3483_s3 }
 0xb91   :  { %v2139_v37 = vpop.f32.mrb[10].mxu1 }
 0xb92   :  { %v2144_v53 = vadd.f32 %v2139_v37, %v3795_v10  ;;  %v2141_v39 = vpop.f32.mrb[11].mxu1  ;;  %v2516_v37 = vld [vmem:[#allocation9 + $0x10] sm:$0xff] }
 0xb93   :  { %v2145_v3 = vadd.f32 %v2141_v39, %v3801_v28 }
 0xb94   :  { %v2146_v1 = vmul.f32 0.5, %v2144_v53  ;;  %v2517_v53 = vld [vmem:[#allocation9 + $0x18] sm:$0xff] }
 0xb95   :  { %v2150_v4 = vmul.f32 0.5, %v2145_v3  ;;  %v3144_v39 = vpack.c.bf16 %v2517_v53, %v2516_v37 }
 0xb96   :  { %3334 = vtanh.f32 %v2146_v1  ;;  %v2518_v1 = vld [vmem:[#allocation9 + $0x20] sm:$0xff] }
 0xb97   :  { %3336 = vtanh.f32 %v2145_v3  ;;  %v2519_v3 = vld [vmem:[#allocation9 + $0x28] sm:$0xff] }
 0xb98   :  { %3338 = vtanh.f32 %v2243_v25  ;;  %v2523_v25 = vld [vmem:[#allocation9 + $0x48] sm:$0xff] }
 0xba0   :  { %v3335_v9 = vpop.eup %3334 }
 0xba1   :  { %v2148_v14 = vmul.f32 0.5, %v3335_v9  ;;  %v3337_v18 = vpop.eup %3336  ;;  %v3147_v9 = vpack.c.bf16 %v2519_v3, %v2518_v1 }
 0xba2   :  { %v3339_v40 = vpop.eup %3338 }
 0xba3   :  { %v2149_v7 = vadd.f32 0.5, %v2148_v14  ;;  %v2245_v41 = vmul.f32 0.5, %v3339_v40  ;;  %v2520_v14 = vld [vmem:[#allocation9 + $0x30] sm:$0xff]  ;;  %v2526_v40 = vld [vmem:[#allocation9 + $0x60] sm:$0xff] }
 0xba5   :  { %v2156_v19 = vmul.f32 %v3337_v18, %v2149_v7  ;;  %v2246_v45 = vadd.f32 0.5, %v2245_v41  ;;  %v2155_v47 = vmul.f32 %v2149_v7, %v4027_v29  ;;  %v2521_v7 = vld [vmem:[#allocation9 + $0x38] sm:$0xff]  ;;  %v2527_v41 = vld [vmem:[#allocation9 + $0x68] sm:$0xff] }
 0xba6   :  { %v3150_v18 = vpack.c.bf16 %v2521_v7, %v2520_v14 }
 0xba7   :  { %2158 = vrot.lane.b32.xlu1 %v2156_v19, %s3483_s3  ;;  %v2522_v19 = vld [vmem:[#allocation9 + $0x40] sm:$0xff] }
 0xbfa   :  { %v2252_v30 = vpop.permute.xlu0 %2251 }
 0xbfb   :  { %v2254_v38 = vadd.f32 %v2252_v30, %v2248_v26  ;;  %v3153_v26 = vpack.c.bf16 %v2523_v25, %v2522_v19  ;;  %v2525_v30 = vld [vmem:[#allocation9 + $0x58] sm:$0xff] }
 0xbfd   :  { %3340 = vtanh.f32 %v2254_v38 }
 0xbfe   :  { %3342 = vtanh.f32 %v2150_v4 }
 0xc07   :  { %v3341_v46 = vpop.eup %3340 }
 0xc08   :  { %v2256_v63 = vmul.f32 %v3341_v46, %v2246_v45  ;;  %v3343_v8 = vpop.eup %3342  ;;  %v3159_v45 = vpack.c.bf16 %v2527_v41, %v2526_v40  ;;  %v2528_v46 = vld [vmem:[#allocation9 + $0x70] sm:$0xff] }
 0xc09   :  { %v2152_v52 = vmul.f32 0.5, %v3343_v8 }
 0xc0b   :  { %v2153_v54 = vadd.f32 0.5, %v2152_v52 }
 0xc19   :  { %v2159_v49 = vpop.permute.xlu1 %2158 }
 0xc1a   :  { %v2161_v51 = vadd.f32 %v2159_v49, %v2155_v47  ;;  %v2661_v47 = vld [vmem:[%s4138_s8] ss:$0 sm:$0xff]  ;;  %s3444_s8 = scalar_lea.vmem %s2619_s18, 128 }
 0xc1b   :  { %p3445_p4 = scmp.ne.s32.totalorder %s2619_s18, %s3444_s8  ;;  %p3450_p6 = scmp.lt.s32.totalorder %s3444_s8, %s3444_s8 }
 0xc1c   :  { %3344 = vtanh.f32 %v2161_v51 }
 0xc1d   :  { %p3451_p7 = por %p3450_p6, %p3449_p5 }
 0xc1f   :  { %p3452_p8 = pnand %p3451_p7, %p3445_p4 }
 0xc26   :  { %v3345_v59 = vpop.eup %3344 }
 0xc27   :  { %v2163_v2 = vmul.f32 %v3345_v59, %v2153_v54  ;;  %v2663_v54 = vld [vmem:[%s4140_s10] ss:$0 sm:$0xff] }
 0xc29   :  { %2659 = vmatmul.mubr.msk.f32.vlgmr.msra.gmra.mrb[20].mxu0 %vm294_vm2, %v2163_v2 }
 0xc2a   :  { %3115 = vmatpush1.bf16.msra.mxu0 %v3744_v16  ;;  %2398 = vmatprep.mubr.f32.mxu0 %v3482_v0 }
 0xc2b   :  { %3117 = vmatprep.subr.bf16.mxu0 %v3747_v21 }
 0xc2e   :  { %3119 = vmatpush1.bf16.msra.mxu0 %v3749_v24 }
 0xc2f   :  { %3121 = vmatprep.subr.bf16.mxu0 %v3752_v31  ;;  %v2425_v31 = vld [vmem:[%s4137_s7] sm:$0xff] }
 0xc32   :  { %3123 = vmatpush1.bf16.msra.mxu0 %v3755_v35  ;;  %v2426_v35 = vld [vmem:[%s4137_s7 + $0x8] sm:$0xff] }
 0xc33   :  { %3125 = vmatprep.subr.bf16.mxu0 %v3758_v36  ;;  %v3129_v36 = vpack.c.bf16 %v2426_v35, %v2425_v31 }
 0xc35   :  { %3130 = vmatpush3.bf16.msra.mxu1 %v3129_v36 }
 0xc36   :  { %3127 = vmatpush1.bf16.msra.mxu0 %v3761_v44  ;;  %v2427_v44 = vld [vmem:[%s4137_s7 + $0x10] sm:$0xff]  ;;  %3131 = vmatprep.subr.bf16.mxu1 %v3484_v5 }
 0xc39   :  { %2660 = vmatmul.mubr.msk.f32.vlgmr.msra.gmra.mrb[20].mxu0 %vm294_vm2, %v2256_v63  ;;  %v2529_v63 = vld [vmem:[#allocation9 + $0x78] sm:$0xff] }
 0xc3a   :  { %v3162_v4 = vpack.c.bf16 %v2529_v63, %v2528_v46 }
 0xd0c   :  { %v2400_v16 = vpop.f32.mrb[20].mxu0 }
 0xd0d   :  { %v2405_v6 = vadd.f32 %v2400_v16, %v3795_v10  ;;  %v2402_v12 = vpop.f32.mrb[21].mxu0  ;;  %v2428_v10 = vld [vmem:[%s4137_s7 + $0x18] sm:$0xff] }
 0xd0e   :  { %v2406_v24 = vadd.f32 %v2402_v12, %v3801_v28  ;;  %v3132_v28 = vpack.c.bf16 %v2428_v10, %v2427_v44 }
 0xd0f   :  { %v2407_v21 = vmul.f32 0.5, %v2405_v6 }
 0xd10   :  { %3133 = vmatpush3.bf16.msra.mxu1 %v3132_v28  ;;  %v2411_v32 = vmul.f32 0.5, %v2406_v24 }
 0xd11   :  { %3346 = vtanh.f32 %v2407_v21  ;;  %3134 = vmatprep.subr.bf16.mxu1 %v3484_v5 }
 0xd12   :  { %3348 = vtanh.f32 %v2406_v24 }
 0xd13   :  { %3350 = vtanh.f32 %v2411_v32 }
 0xd14   :  { %3136 = vmatpush3.bf16.msra.mxu1 %v3135_v20 }
 0xd15   :  { %3137 = vmatprep.subr.bf16.mxu1 %v3484_v5 }
 0xd18   :  { %3139 = vmatpush3.bf16.msra.mxu1 %v3138_v62 }
 0xd19   :  { %3140 = vmatprep.subr.bf16.mxu1 %v3484_v5 }
 0xd1b   :  { %v3347_v17 = vpop.eup %3346 }
 0xd1c   :  { %v2409_v60 = vmul.f32 0.5, %v3347_v17  ;;  %v3349_v27 = vpop.eup %3348 }
 0xd1d   :  { %v3351_v48 = vpop.eup %3350 }
 0xd1e   :  { %v2410_v29 = vadd.f32 0.5, %v2409_v60  ;;  %v2413_v50 = vmul.f32 0.5, %v3351_v48 }
 0xd20   :  { %v2417_v11 = vmul.f32 %v3349_v27, %v2410_v29  ;;  %v2416_v22 = vmul.f32 %v2410_v29, %v2161_v51  ;;  %v2414_v58 = vadd.f32 0.5, %v2413_v50 }
 0xd22   :  { %2419 = vrot.lane.b32.xlu1 %v2417_v11, %s3483_s3 }
 0xd94   :  { %v2420_v42 = vpop.permute.xlu1 %2419 }
 0xd95   :  { %v2422_v43 = vadd.f32 %v2420_v42, %v2416_v22 }
 0xd97   :  { %3352 = vtanh.f32 %v2422_v43 }
 0xda1   :  { %v3353_v61 = vpop.eup %3352 }
 0xda2   :  { %v2424_v34 = vmul.f32 %v3353_v61, %v2414_v58 }
 0xda4   :  { %2707 = vmatmul.mubr.msk.f32.vlgmr.msra.gmra.mrb[12].mxu1 %vm294_vm2, %v2424_v34 }
 0xda5   :  { %3142 = vmatpush3.bf16.msra.mxu1 %v3141_v33  ;;  %2741 = vmatprep.mubr.msk.f32.mxu1 %vm3485_vm3, %v3482_v0  ;;  %v2524_v0 = vld [vmem:[#allocation9 + $0x50] sm:$0xff] }
 0xda6   :  { %3143 = vmatprep.subr.bf16.mxu1 %v3484_v5  ;;  %v3156_v38 = vpack.c.bf16 %v2525_v30, %v2524_v0 }
 0xda9   :  { %3145 = vmatpush3.bf16.msra.mxu1 %v3144_v39 }
 0xdaa   :  { %3146 = vmatprep.subr.bf16.mxu1 %v3484_v5 }
 0xdad   :  { %3148 = vmatpush3.bf16.msra.mxu1 %v3147_v9 }
 0xdae   :  { %3149 = vmatprep.subr.bf16.mxu1 %v3484_v5 }
 0xdb1   :  { %3151 = vmatpush3.bf16.msra.mxu1 %v3150_v18 }
 0xdb2   :  { %3152 = vmatprep.subr.bf16.mxu1 %v3484_v5 }
 0xdb5   :  { %3154 = vmatpush3.bf16.msra.mxu1 %v3153_v26 }
 0xdb6   :  { %3155 = vmatprep.subr.bf16.mxu1 %v3484_v5 }
 0xdb9   :  { %3157 = vmatpush3.bf16.msra.mxu1 %v3156_v38 }
 0xdba   :  { %3158 = vmatprep.subr.bf16.mxu1 %v3484_v5 }
 0xdbd   :  { %3160 = vmatpush3.bf16.msra.mxu1 %v3159_v45 }
 0xdbe   :  { %3161 = vmatprep.subr.bf16.mxu1 %v3484_v5 }
 0xdc1   :  { %3163 = vmatpush3.bf16.msra.mxu1 %v3162_v4 }
 0xe77   :  { %v2509_v49 = vpop.f32.mrb[12].mxu1 }
 0xe78   :  { %v2510_v51 = vadd.f32 %v2661_v47, %v2509_v49  ;;  %v2708_v8 = vpop.f32.mrb[13].mxu1 }
 0xe7a   :  { %v2513_v52 = vmax.f32 %v2510_v51, 0.0 }
 0xe7c   :  { %2742 = vmatmul.mubr.f32.vlgmr.msra.gmra.mrb[14].mxu1 %v2513_v52 }
 0xf4f   :  { %v2603_v59 = vpop.f32.mrb[14].mxu1 }
 0xf50   :  { %v2604_v2 = vadd.f32 %v2663_v54, %v2603_v59  ;;  %v2743_v5 = vpop.f32.mrb[15].mxu1 }
 0xf52   :  { %v2607_v16 = vmul.f32 0.5, %v2604_v2 }
 0xf54   :  { %3354 = vtanh.f32 %v2607_v16 }
 0xf5e   :  { %v3355_v6 = vpop.eup %3354 }
 0xf5f   :  { %v2609_v12 = vmul.f32 0.5, %v3355_v6 }
 0xf61   :  { %v2610_v21 = vadd.f32 0.5, %v2609_v12 }
 0xf63   :  { %2611 = vst [vmem:[#allocation11] sm:$0xff] %v2610_v21 }
 0xf64   :  { %3455 = shalt.err (!%p3452_p8)
}
 0xf65   :  { %s3456_s0 = scalar_lea.hbm %s4141_s11, 128 }
 0xf66   :  { %p3457_p9 = scmp.ne.s32.totalorder %s4141_s11, %s3456_s0  ;;  %p3460_p10 = scmp.lt.u32.totalorder %s3456_s0, %s4141_s11 }
 0xf68   :  { %p3462_p11 = pnand %p3460_p10, %p3457_p9 }
 0xf6a   :  { %3465 = shalt.err (!%p3462_p11)
}
 0xf6b   :  { %2621 = dma.vmem_to_hbm [thread:$0]  %s2619_s18, 128, %s4141_s11, [#allocation5]  }
 0xf6c   :  { %3472 = dma.done.wait [#allocation5], 128  }
 0xf6d   :  { %3473 = vsyncadd [#allocation5], 4294967168 }
 0xf6e   :  { %2625 = vsyncpa [#allocation4], 1 }
 0xf6f   :  { %2626 = vsyncpa [#allocation7], 1 }
 0xf70   :  { %2627 = vsyncpa [#allocation10], 1 }
 0xf71   :  { %2628 = vsyncpa [#allocation5], 1 }

</bundles_post_ra>
